<compile_context>
chip_gen: v5e
topology: v5e:2x2
jax: 0.10.0
libtpu: 0.0.40
codegen_flags: <defaults>
</compile_context>

<pallas_src>
import functools

import jax
import jax.numpy as jnp
from jax import lax
from jax.experimental import pallas as pl
from jax.experimental.pallas import tpu as pltpu


def _cdiv(a, b):
    return (a + b - 1) // b


def _downsample_kernel(main_ref, extra_ref, wm_ref, ws_ref, b_ref, o_ref, *, rpb, w_out):
    """One (batch, row-block) grid step.

    main_ref : (rpb, 2, w_out+1, 2C) row-pairs oh0..oh0+rpb-1; dim1 = row parity,
               last dim = [even input col | odd input col] channels.
    extra_ref: (w_out+1, 2C)         even input row of row-pair oh0+rpb
                                     (the kh=2 taps of the block's last output row).
    wm_ref   : (6C, C)               weights of taps kw in {0,1} for the 3 kernel rows.
    ws_ref   : (6C, C)               weights of tap kw=2 (odd-column halves zeroed).
    b_ref    : (1, C)                bias, f32.
    o_ref    : (rpb, w_out, C)       output rows oh0..oh0+rpb-1.
    """
    wm = wm_ref[...]
    ws = ws_ref[...]
    bias = b_ref[...]
    for r in range(rpb):                       # static unroll (rpb <= 16)
        ev = main_ref[r, 0]                    # even input row 2*(oh0+r)   -> kh=0 taps
        od = main_ref[r, 1]                    # odd  input row 2*(oh0+r)+1 -> kh=1 taps
        if r + 1 < rpb:
            ev_n = main_ref[r + 1, 0]          # even input row 2*(oh0+r)+2 -> kh=2 taps
        else:
            ev_n = extra_ref[...]
        x_row = jnp.concatenate([ev, od, ev_n], axis=-1)            # (w_out+1, 6C)
        y_main = jnp.dot(x_row, wm, preferred_element_type=jnp.float32)   # kw 0,1 taps
        y_kw2 = jnp.dot(x_row, ws, preferred_element_type=jnp.float32)    # kw 2 taps
        out = y_main[:w_out, :] + y_kw2[1:, :] + bias                # (w_out, C) f32
        o_ref[r] = out.astype(o_ref.dtype)


@functools.partial(jax.jit, static_argnames=("compute_dtype", "rows_per_block"))
def downsample_forward(x, weight, bias, *, compute_dtype=jnp.bfloat16, rows_per_block=None):
    """Forward pass of Downsample.

    x:      (B, C, H, W) float32, NCHW (PyTorch layout)
    weight: (C, C, 3, 3) float32, OIHW (PyTorch Conv2d layout)
    bias:   (C,) float32
    returns (B, C, H//2, W//2) float32, NCHW
    """
    B, C, H, W = x.shape
    c_out, c_in, kh_, kw_ = weight.shape
    assert (c_out, c_in, kh_, kw_) == (C, C, 3, 3), "Downsample conv must be CxCx3x3"
    assert H >= 2 and W >= 2

    h_out, w_out = H // 2, W // 2
    w_pairs = w_out + 1
    itm = jnp.dtype(compute_dtype).itemsize

    # ---- auto-size rows-per-block: ~2-3 MiB of (input block + f32 output block) ----
    per_row = 2 * w_pairs * 2 * C * itm + w_out * C * 4
    if rows_per_block is None:
        rpb = max(1, min(16, (3 * 1024 * 1024) // max(per_row, 1)))
    else:
        rpb = max(1, int(rows_per_block))
    rpb = min(rpb, h_out)
    if B == 1:                                  # keep >= 2 grid steps for the 2 v7x TCs
        rpb = min(rpb, max(1, _cdiv(h_out, 2)))
    n_blk = _cdiv(h_out, rpb)
    h_out_pad = n_blk * rpb                     # extra rows computed then cropped
    h_pairs = h_out_pad + 1

    # ---- layout plumbing (all in compute_dtype; final reshape is a free bitcast) ----
    xh = jnp.transpose(x.astype(compute_dtype), (0, 2, 3, 1))                # (B,H,W,C)
    xh = jnp.pad(xh, ((0, 0), (0, 2 * h_pairs - H), (0, 2 * w_pairs - W), (0, 0)))
    xr = xh.reshape(B, h_pairs, 2, w_pairs, 2 * C)     # fold col pairs into lanes

    # weight[(co,ci,kh,kw)] -> wt[kh,kw,ci,co]
    wt = jnp.transpose(weight, (2, 3, 1, 0)).astype(compute_dtype)
    wm = jnp.concatenate(
        [wt[0, 0], wt[0, 1], wt[1, 0], wt[1, 1], wt[2, 0], wt[2, 1]], axis=0)  # (6C, C)
    zc = jnp.zeros((C, C), compute_dtype)
    ws = jnp.concatenate([wt[0, 2], zc, wt[1, 2], zc, wt[2, 2], zc], axis=0)   # (6C, C)
    b2 = bias.reshape(1, C).astype(jnp.float32)

    # ---- explicit VMEM budget (double-buffered blocks + resident weights + temps) ----
    main_b = rpb * 2 * w_pairs * 2 * C * itm
    extra_b = w_pairs * 2 * C * itm
    out_b = rpb * w_out * C * 4
    temps = rpb * (w_pairs * 6 * C * itm + 2 * w_pairs * C * 4 + w_out * C * 4)
    resident = 2 * 6 * C * C * itm + C * 4
    est = 2 * (main_b + extra_b + out_b) + 2 * resident + temps
    vmem_limit = int(min(48 * 1024 * 1024, max(32 * 1024 * 1024, est + (8 << 20))))

    kernel = functools.partial(_downsample_kernel, rpb=rpb, w_out=w_out)
    out = pl.pallas_call(
        kernel,
        out_shape=jax.ShapeDtypeStruct((B, h_out_pad, w_out, C), jnp.float32),
        grid_spec=pltpu.PrefetchScalarGridSpec(
            num_scalar_prefetch=0,
            grid=(B, n_blk),
            in_specs=[
                # rpb row-pairs per step (reads every row-pair exactly once)
                pl.BlockSpec((None, rpb, 2, w_pairs, 2 * C),
                             lambda b, i: (b, i, 0, 0, 0)),
                # one extra even row (row-pair oh0+rpb) for the block-boundary kh=2 taps
                pl.BlockSpec((None, None, None, w_pairs, 2 * C),
                             lambda b, i: (b, rpb * (i + 1), 0, 0, 0)),
                pl.BlockSpec((6 * C, C), lambda b, i: (0, 0)),   # resident weights (kw 0,1)
                pl.BlockSpec((6 * C, C), lambda b, i: (0, 0)),   # resident weights (kw 2)
                pl.BlockSpec((1, C), lambda b, i: (0, 0)),       # resident bias
            ],
            out_specs=pl.BlockSpec((None, rpb, w_out, C), lambda b, i: (b, i, 0, 0)),
        ),
        compiler_params=pltpu.CompilerParams(
            dimension_semantics=("parallel", "parallel"),
            vmem_limit_bytes=vmem_limit,
        ),
    )(xr, xr, wm, ws, b2)

    out = out[:, :h_out]                               # crop padded output rows
    return jnp.transpose(out, (0, 3, 1, 2)).astype(x.dtype)   # back to NCHW


def _ref_downsample(x, weight, bias):
    """Plain-JAX reference: F.pad((0,1,0,1)) + Conv2d(C,C,3,stride=2)."""
    xp = jnp.pad(x, ((0, 0), (0, 0), (0, 1), (0, 1)))
    y = lax.conv_general_dilated(
        xp, weight, window_strides=(2, 2), padding="VALID",
        dimension_numbers=("NCHW", "OIHW", "NCHW"),
        precision=lax.Precision.HIGHEST)
    return y + bias[None, :, None, None]


if __name__ == "__main__":
    key = jax.random.PRNGKey(0)
    k_x, k_w, k_b = jax.random.split(key, 3)

    B, C, H, W = 2, 64, 16, 16
    x = jax.random.normal(k_x, (B, C, H, W), jnp.float32)
    weight = jax.random.normal(k_w, (C, C, 3, 3), jnp.float32) / jnp.sqrt(9.0 * C)
    bias = 0.1 * jax.random.normal(k_b, (C,), jnp.float32)

    y_ref = _ref_downsample(x, weight, bias)

    # f32 compute path: tight check against the XLA conv reference.
    y32 = downsample_forward(x, weight, bias, compute_dtype=jnp.float32)
    jax.block_until_ready((y32, y_ref))
    assert y32.shape == (B, C, H // 2, W // 2)
    assert jnp.allclose(y32, y_ref, atol=1e-3, rtol=1e-3), \
        float(jnp.max(jnp.abs(y32 - y_ref)))

    # bf16 MXU path (default): looser tolerance.
    ybf = downsample_forward(x, weight, bias)
    jax.block_until_ready(ybf)
    assert jnp.allclose(ybf, y_ref, atol=5e-2, rtol=5e-2), \
        float(jnp.max(jnp.abs(ybf - y_ref)))

    # odd spatial dims exercise the asymmetric (0,1,0,1) padding + row-block padding.
    x_odd = jax.random.normal(k_x, (1, C, 15, 13), jnp.float32)
    y_odd = downsample_forward(x_odd, weight, bias, compute_dtype=jnp.float32)
    y_odd_ref = _ref_downsample(x_odd, weight, bias)
    jax.block_until_ready((y_odd, y_odd_ref))
    assert y_odd.shape == (1, C, 7, 6)
    assert jnp.allclose(y_odd, y_odd_ref, atol=1e-3, rtol=1e-3), \
        float(jnp.max(jnp.abs(y_odd - y_odd_ref)))

    print("KERNEL_OK")
</pallas_src>

<mosaic_0001>
module attributes {stable_mosaic.version = 11 : i64} {
  func.func @_downsample_kernel(%arg0: i32, %arg1: i32, %arg2: memref<1x8x2x9x128xf32, #tpu.memory_space<vmem>>, %arg3: memref<1x1x1x9x128xf32, #tpu.memory_space<vmem>>, %arg4: memref<384x64xf32, #tpu.memory_space<vmem>>, %arg5: memref<384x64xf32, #tpu.memory_space<vmem>>, %arg6: memref<1x64xf32, #tpu.memory_space<vmem>>, %arg7: memref<1x8x8x64xf32, #tpu.memory_space<vmem>>) attributes {dimension_semantics = [#tpu.dimension_semantics<parallel>, #tpu.dimension_semantics<parallel>], iteration_bounds = array<i64: 2, 1>, scalar_prefetch = 0 : i64, scratch_operands = 0 : i64, tpu.core_type = #tpu.core_type<tc>, window_params = [{transform_indices = @transform_0, window_bounds = array<i64: 1, 8, 2, 9, 128>}, {transform_indices = @transform_1, window_bounds = array<i64: 1, 1, 1, 9, 128>}, {pipeline_mode = #tpu.pipeline_mode<synchronous>, transform_indices = @transform_2, window_bounds = array<i64: 384, 64>}, {pipeline_mode = #tpu.pipeline_mode<synchronous>, transform_indices = @transform_3, window_bounds = array<i64: 384, 64>}, {pipeline_mode = #tpu.pipeline_mode<synchronous>, transform_indices = @transform_4, window_bounds = array<i64: 1, 64>}, {transform_indices = @transform_5, window_bounds = array<i64: 1, 8, 8, 64>}]} {
    %c0 = arith.constant 0 : index
    %c0_0 = arith.constant 0 : index
    %0 = vector.load %arg4[%c0, %c0_0] : memref<384x64xf32, #tpu.memory_space<vmem>>, vector<384x64xf32>
    %c0_1 = arith.constant 0 : index
    %c0_2 = arith.constant 0 : index
    %1 = vector.load %arg5[%c0_1, %c0_2] : memref<384x64xf32, #tpu.memory_space<vmem>>, vector<384x64xf32>
    %c0_3 = arith.constant 0 : index
    %c0_4 = arith.constant 0 : index
    %2 = vector.load %arg6[%c0_3, %c0_4] : memref<1x64xf32, #tpu.memory_space<vmem>>, vector<1x64xf32>
    %c0_5 = arith.constant 0 : index
    %c0_6 = arith.constant 0 : index
    %c0_7 = arith.constant 0 : index
    %c0_8 = arith.constant 0 : index
    %c0_9 = arith.constant 0 : index
    %3 = vector.load %arg2[%c0_5, %c0_6, %c0_7, %c0_8, %c0_9] : memref<1x8x2x9x128xf32, #tpu.memory_space<vmem>>, vector<1x1x1x9x128xf32>
    %4 = vector.shape_cast %3 : vector<1x1x1x9x128xf32> to vector<9x128xf32>
    %c0_10 = arith.constant 0 : index
    %c0_11 = arith.constant 0 : index
    %c1 = arith.constant 1 : index
    %c0_12 = arith.constant 0 : index
    %c0_13 = arith.constant 0 : index
    %5 = vector.load %arg2[%c0_10, %c0_11, %c1, %c0_12, %c0_13] : memref<1x8x2x9x128xf32, #tpu.memory_space<vmem>>, vector<1x1x1x9x128xf32>
    %6 = vector.shape_cast %5 : vector<1x1x1x9x128xf32> to vector<9x128xf32>
    %c0_14 = arith.constant 0 : index
    %c1_15 = arith.constant 1 : index
    %c0_16 = arith.constant 0 : index
    %c0_17 = arith.constant 0 : index
    %c0_18 = arith.constant 0 : index
    %7 = vector.load %arg2[%c0_14, %c1_15, %c0_16, %c0_17, %c0_18] : memref<1x8x2x9x128xf32, #tpu.memory_space<vmem>>, vector<1x1x1x9x128xf32>
    %8 = vector.shape_cast %7 : vector<1x1x1x9x128xf32> to vector<9x128xf32>
    %9 = tpu.concatenate %4, %6, %8 in 1 : vector<9x128xf32>, vector<9x128xf32>, vector<9x128xf32> -> vector<9x384xf32>
    %cst = arith.constant dense<0.000000e+00> : vector<9x64xf32>
    %10 = tpu.matmul %9, %0, %cst {dimension_numbers = #tpu.dot_dimension_numbers<[1], [0], [0], [1], [0, 0, 1, 1], [], []>} : vector<9x384xf32>, vector<384x64xf32>, vector<9x64xf32> -> vector<9x64xf32>
    %cst_19 = arith.constant dense<0.000000e+00> : vector<9x64xf32>
    %11 = tpu.matmul %9, %1, %cst_19 {dimension_numbers = #tpu.dot_dimension_numbers<[1], [0], [0], [1], [0, 0, 1, 1], [], []>} : vector<9x384xf32>, vector<384x64xf32>, vector<9x64xf32> -> vector<9x64xf32>
    %12 = vector.extract_strided_slice %10 {offsets = [0, 0], sizes = [8, 64], strides = [1, 1]} : vector<9x64xf32> to vector<8x64xf32>
    %13 = vector.extract_strided_slice %11 {offsets = [1, 0], sizes = [8, 64], strides = [1, 1]} : vector<9x64xf32> to vector<8x64xf32>
    %14 = arith.addf %12, %13 : vector<8x64xf32>
    %15 = vector.broadcast %2 : vector<1x64xf32> to vector<8x64xf32>
    %16 = arith.addf %14, %15 : vector<8x64xf32>
    %c0_20 = arith.constant 0 : index
    %c0_21 = arith.constant 0 : index
    %c0_22 = arith.constant 0 : index
    %c0_23 = arith.constant 0 : index
    %17 = vector.load %arg7[%c0_20, %c0_21, %c0_22, %c0_23] : memref<1x8x8x64xf32, #tpu.memory_space<vmem>>, vector<1x1x8x64xf32>
    %18 = vector.shape_cast %17 : vector<1x1x8x64xf32> to vector<8x64xf32>
    %19 = vector.shape_cast %16 : vector<8x64xf32> to vector<1x1x8x64xf32>
    tpu.vector_store %arg7[%c0_20, %c0_21, %c0_22, %c0_23], %19 {strides = array<i32>} : memref<1x8x8x64xf32, #tpu.memory_space<vmem>>, vector<1x1x8x64xf32>,
    %c0_24 = arith.constant 0 : index
    %c1_25 = arith.constant 1 : index
    %c0_26 = arith.constant 0 : index
    %c0_27 = arith.constant 0 : index
    %c0_28 = arith.constant 0 : index
    %20 = vector.load %arg2[%c0_24, %c1_25, %c0_26, %c0_27, %c0_28] : memref<1x8x2x9x128xf32, #tpu.memory_space<vmem>>, vector<1x1x1x9x128xf32>
    %21 = vector.shape_cast %20 : vector<1x1x1x9x128xf32> to vector<9x128xf32>
    %c0_29 = arith.constant 0 : index
    %c1_30 = arith.constant 1 : index
    %c1_31 = arith.constant 1 : index
    %c0_32 = arith.constant 0 : index
    %c0_33 = arith.constant 0 : index
    %22 = vector.load %arg2[%c0_29, %c1_30, %c1_31, %c0_32, %c0_33] : memref<1x8x2x9x128xf32, #tpu.memory_space<vmem>>, vector<1x1x1x9x128xf32>
    %23 = vector.shape_cast %22 : vector<1x1x1x9x128xf32> to vector<9x128xf32>
    %c0_34 = arith.constant 0 : index
    %c2 = arith.constant 2 : index
    %c0_35 = arith.constant 0 : index
    %c0_36 = arith.constant 0 : index
    %c0_37 = arith.constant 0 : index
    %24 = vector.load %arg2[%c0_34, %c2, %c0_35, %c0_36, %c0_37] : memref<1x8x2x9x128xf32, #tpu.memory_space<vmem>>, vector<1x1x1x9x128xf32>
    %25 = vector.shape_cast %24 : vector<1x1x1x9x128xf32> to vector<9x128xf32>
    %26 = tpu.concatenate %21, %23, %25 in 1 : vector<9x128xf32>, vector<9x128xf32>, vector<9x128xf32> -> vector<9x384xf32>
    %cst_38 = arith.constant dense<0.000000e+00> : vector<9x64xf32>
    %27 = tpu.matmul %26, %0, %cst_38 {dimension_numbers = #tpu.dot_dimension_numbers<[1], [0], [0], [1], [0, 0, 1, 1], [], []>} : vector<9x384xf32>, vector<384x64xf32>, vector<9x64xf32> -> vector<9x64xf32>
    %cst_39 = arith.constant dense<0.000000e+00> : vector<9x64xf32>
    %28 = tpu.matmul %26, %1, %cst_39 {dimension_numbers = #tpu.dot_dimension_numbers<[1], [0], [0], [1], [0, 0, 1, 1], [], []>} : vector<9x384xf32>, vector<384x64xf32>, vector<9x64xf32> -> vector<9x64xf32>
    %29 = vector.extract_strided_slice %27 {offsets = [0, 0], sizes = [8, 64], strides = [1, 1]} : vector<9x64xf32> to vector<8x64xf32>
    %30 = vector.extract_strided_slice %28 {offsets = [1, 0], sizes = [8, 64], strides = [1, 1]} : vector<9x64xf32> to vector<8x64xf32>
    %31 = arith.addf %29, %30 : vector<8x64xf32>
    %32 = vector.broadcast %2 : vector<1x64xf32> to vector<8x64xf32>
    %33 = arith.addf %31, %32 : vector<8x64xf32>
    %c0_40 = arith.constant 0 : index
    %c1_41 = arith.constant 1 : index
    %c0_42 = arith.constant 0 : index
    %c0_43 = arith.constant 0 : index
    %34 = vector.load %arg7[%c0_40, %c1_41, %c0_42, %c0_43] : memref<1x8x8x64xf32, #tpu.memory_space<vmem>>, vector<1x1x8x64xf32>
    %35 = vector.shape_cast %34 : vector<1x1x8x64xf32> to vector<8x64xf32>
    %36 = vector.shape_cast %33 : vector<8x64xf32> to vector<1x1x8x64xf32>
    tpu.vector_store %arg7[%c0_40, %c1_41, %c0_42, %c0_43], %36 {strides = array<i32>} : memref<1x8x8x64xf32, #tpu.memory_space<vmem>>, vector<1x1x8x64xf32>,
    %c0_44 = arith.constant 0 : index
    %c2_45 = arith.constant 2 : index
    %c0_46 = arith.constant 0 : index
    %c0_47 = arith.constant 0 : index
    %c0_48 = arith.constant 0 : index
    %37 = vector.load %arg2[%c0_44, %c2_45, %c0_46, %c0_47, %c0_48] : memref<1x8x2x9x128xf32, #tpu.memory_space<vmem>>, vector<1x1x1x9x128xf32>
    %38 = vector.shape_cast %37 : vector<1x1x1x9x128xf32> to vector<9x128xf32>
    %c0_49 = arith.constant 0 : index
    %c2_50 = arith.constant 2 : index
    %c1_51 = arith.constant 1 : index
    %c0_52 = arith.constant 0 : index
    %c0_53 = arith.constant 0 : index
    %39 = vector.load %arg2[%c0_49, %c2_50, %c1_51, %c0_52, %c0_53] : memref<1x8x2x9x128xf32, #tpu.memory_space<vmem>>, vector<1x1x1x9x128xf32>
    %40 = vector.shape_cast %39 : vector<1x1x1x9x128xf32> to vector<9x128xf32>
    %c0_54 = arith.constant 0 : index
    %c3 = arith.constant 3 : index
    %c0_55 = arith.constant 0 : index
    %c0_56 = arith.constant 0 : index
    %c0_57 = arith.constant 0 : index
    %41 = vector.load %arg2[%c0_54, %c3, %c0_55, %c0_56, %c0_57] : memref<1x8x2x9x128xf32, #tpu.memory_space<vmem>>, vector<1x1x1x9x128xf32>
    %42 = vector.shape_cast %41 : vector<1x1x1x9x128xf32> to vector<9x128xf32>
    %43 = tpu.concatenate %38, %40, %42 in 1 : vector<9x128xf32>, vector<9x128xf32>, vector<9x128xf32> -> vector<9x384xf32>
    %cst_58 = arith.constant dense<0.000000e+00> : vector<9x64xf32>
    %44 = tpu.matmul %43, %0, %cst_58 {dimension_numbers = #tpu.dot_dimension_numbers<[1], [0], [0], [1], [0, 0, 1, 1], [], []>} : vector<9x384xf32>, vector<384x64xf32>, vector<9x64xf32> -> vector<9x64xf32>
    %cst_59 = arith.constant dense<0.000000e+00> : vector<9x64xf32>
    %45 = tpu.matmul %43, %1, %cst_59 {dimension_numbers = #tpu.dot_dimension_numbers<[1], [0], [0], [1], [0, 0, 1, 1], [], []>} : vector<9x384xf32>, vector<384x64xf32>, vector<9x64xf32> -> vector<9x64xf32>
    %46 = vector.extract_strided_slice %44 {offsets = [0, 0], sizes = [8, 64], strides = [1, 1]} : vector<9x64xf32> to vector<8x64xf32>
    %47 = vector.extract_strided_slice %45 {offsets = [1, 0], sizes = [8, 64], strides = [1, 1]} : vector<9x64xf32> to vector<8x64xf32>
    %48 = arith.addf %46, %47 : vector<8x64xf32>
    %49 = vector.broadcast %2 : vector<1x64xf32> to vector<8x64xf32>
    %50 = arith.addf %48, %49 : vector<8x64xf32>
    %c0_60 = arith.constant 0 : index
    %c2_61 = arith.constant 2 : index
    %c0_62 = arith.constant 0 : index
    %c0_63 = arith.constant 0 : index
    %51 = vector.load %arg7[%c0_60, %c2_61, %c0_62, %c0_63] : memref<1x8x8x64xf32, #tpu.memory_space<vmem>>, vector<1x1x8x64xf32>
    %52 = vector.shape_cast %51 : vector<1x1x8x64xf32> to vector<8x64xf32>
    %53 = vector.shape_cast %50 : vector<8x64xf32> to vector<1x1x8x64xf32>
    tpu.vector_store %arg7[%c0_60, %c2_61, %c0_62, %c0_63], %53 {strides = array<i32>} : memref<1x8x8x64xf32, #tpu.memory_space<vmem>>, vector<1x1x8x64xf32>,
    %c0_64 = arith.constant 0 : index
    %c3_65 = arith.constant 3 : index
    %c0_66 = arith.constant 0 : index
    %c0_67 = arith.constant 0 : index
    %c0_68 = arith.constant 0 : index
    %54 = vector.load %arg2[%c0_64, %c3_65, %c0_66, %c0_67, %c0_68] : memref<1x8x2x9x128xf32, #tpu.memory_space<vmem>>, vector<1x1x1x9x128xf32>
    %55 = vector.shape_cast %54 : vector<1x1x1x9x128xf32> to vector<9x128xf32>
    %c0_69 = arith.constant 0 : index
    %c3_70 = arith.constant 3 : index
    %c1_71 = arith.constant 1 : index
    %c0_72 = arith.constant 0 : index
    %c0_73 = arith.constant 0 : index
    %56 = vector.load %arg2[%c0_69, %c3_70, %c1_71, %c0_72, %c0_73] : memref<1x8x2x9x128xf32, #tpu.memory_space<vmem>>, vector<1x1x1x9x128xf32>
    %57 = vector.shape_cast %56 : vector<1x1x1x9x128xf32> to vector<9x128xf32>
    %c0_74 = arith.constant 0 : index
    %c4 = arith.constant 4 : index
    %c0_75 = arith.constant 0 : index
    %c0_76 = arith.constant 0 : index
    %c0_77 = arith.constant 0 : index
    %58 = vector.load %arg2[%c0_74, %c4, %c0_75, %c0_76, %c0_77] : memref<1x8x2x9x128xf32, #tpu.memory_space<vmem>>, vector<1x1x1x9x128xf32>
    %59 = vector.shape_cast %58 : vector<1x1x1x9x128xf32> to vector<9x128xf32>
    %60 = tpu.concatenate %55, %57, %59 in 1 : vector<9x128xf32>, vector<9x128xf32>, vector<9x128xf32> -> vector<9x384xf32>
    %cst_78 = arith.constant dense<0.000000e+00> : vector<9x64xf32>
    %61 = tpu.matmul %60, %0, %cst_78 {dimension_numbers = #tpu.dot_dimension_numbers<[1], [0], [0], [1], [0, 0, 1, 1], [], []>} : vector<9x384xf32>, vector<384x64xf32>, vector<9x64xf32> -> vector<9x64xf32>
    %cst_79 = arith.constant dense<0.000000e+00> : vector<9x64xf32>
    %62 = tpu.matmul %60, %1, %cst_79 {dimension_numbers = #tpu.dot_dimension_numbers<[1], [0], [0], [1], [0, 0, 1, 1], [], []>} : vector<9x384xf32>, vector<384x64xf32>, vector<9x64xf32> -> vector<9x64xf32>
    %63 = vector.extract_strided_slice %61 {offsets = [0, 0], sizes = [8, 64], strides = [1, 1]} : vector<9x64xf32> to vector<8x64xf32>
    %64 = vector.extract_strided_slice %62 {offsets = [1, 0], sizes = [8, 64], strides = [1, 1]} : vector<9x64xf32> to vector<8x64xf32>
    %65 = arith.addf %63, %64 : vector<8x64xf32>
    %66 = vector.broadcast %2 : vector<1x64xf32> to vector<8x64xf32>
    %67 = arith.addf %65, %66 : vector<8x64xf32>
    %c0_80 = arith.constant 0 : index
    %c3_81 = arith.constant 3 : index
    %c0_82 = arith.constant 0 : index
    %c0_83 = arith.constant 0 : index
    %68 = vector.load %arg7[%c0_80, %c3_81, %c0_82, %c0_83] : memref<1x8x8x64xf32, #tpu.memory_space<vmem>>, vector<1x1x8x64xf32>
    %69 = vector.shape_cast %68 : vector<1x1x8x64xf32> to vector<8x64xf32>
    %70 = vector.shape_cast %67 : vector<8x64xf32> to vector<1x1x8x64xf32>
    tpu.vector_store %arg7[%c0_80, %c3_81, %c0_82, %c0_83], %70 {strides = array<i32>} : memref<1x8x8x64xf32, #tpu.memory_space<vmem>>, vector<1x1x8x64xf32>,
    %c0_84 = arith.constant 0 : index
    %c4_85 = arith.constant 4 : index
    %c0_86 = arith.constant 0 : index
    %c0_87 = arith.constant 0 : index
    %c0_88 = arith.constant 0 : index
    %71 = vector.load %arg2[%c0_84, %c4_85, %c0_86, %c0_87, %c0_88] : memref<1x8x2x9x128xf32, #tpu.memory_space<vmem>>, vector<1x1x1x9x128xf32>
    %72 = vector.shape_cast %71 : vector<1x1x1x9x128xf32> to vector<9x128xf32>
    %c0_89 = arith.constant 0 : index
    %c4_90 = arith.constant 4 : index
    %c1_91 = arith.constant 1 : index
    %c0_92 = arith.constant 0 : index
    %c0_93 = arith.constant 0 : index
    %73 = vector.load %arg2[%c0_89, %c4_90, %c1_91, %c0_92, %c0_93] : memref<1x8x2x9x128xf32, #tpu.memory_space<vmem>>, vector<1x1x1x9x128xf32>
    %74 = vector.shape_cast %73 : vector<1x1x1x9x128xf32> to vector<9x128xf32>
    %c0_94 = arith.constant 0 : index
    %c5 = arith.constant 5 : index
    %c0_95 = arith.constant 0 : index
    %c0_96 = arith.constant 0 : index
    %c0_97 = arith.constant 0 : index
    %75 = vector.load %arg2[%c0_94, %c5, %c0_95, %c0_96, %c0_97] : memref<1x8x2x9x128xf32, #tpu.memory_space<vmem>>, vector<1x1x1x9x128xf32>
    %76 = vector.shape_cast %75 : vector<1x1x1x9x128xf32> to vector<9x128xf32>
    %77 = tpu.concatenate %72, %74, %76 in 1 : vector<9x128xf32>, vector<9x128xf32>, vector<9x128xf32> -> vector<9x384xf32>
    %cst_98 = arith.constant dense<0.000000e+00> : vector<9x64xf32>
    %78 = tpu.matmul %77, %0, %cst_98 {dimension_numbers = #tpu.dot_dimension_numbers<[1], [0], [0], [1], [0, 0, 1, 1], [], []>} : vector<9x384xf32>, vector<384x64xf32>, vector<9x64xf32> -> vector<9x64xf32>
    %cst_99 = arith.constant dense<0.000000e+00> : vector<9x64xf32>
    %79 = tpu.matmul %77, %1, %cst_99 {dimension_numbers = #tpu.dot_dimension_numbers<[1], [0], [0], [1], [0, 0, 1, 1], [], []>} : vector<9x384xf32>, vector<384x64xf32>, vector<9x64xf32> -> vector<9x64xf32>
    %80 = vector.extract_strided_slice %78 {offsets = [0, 0], sizes = [8, 64], strides = [1, 1]} : vector<9x64xf32> to vector<8x64xf32>
    %81 = vector.extract_strided_slice %79 {offsets = [1, 0], sizes = [8, 64], strides = [1, 1]} : vector<9x64xf32> to vector<8x64xf32>
    %82 = arith.addf %80, %81 : vector<8x64xf32>
    %83 = vector.broadcast %2 : vector<1x64xf32> to vector<8x64xf32>
    %84 = arith.addf %82, %83 : vector<8x64xf32>
    %c0_100 = arith.constant 0 : index
    %c4_101 = arith.constant 4 : index
    %c0_102 = arith.constant 0 : index
    %c0_103 = arith.constant 0 : index
    %85 = vector.load %arg7[%c0_100, %c4_101, %c0_102, %c0_103] : memref<1x8x8x64xf32, #tpu.memory_space<vmem>>, vector<1x1x8x64xf32>
    %86 = vector.shape_cast %85 : vector<1x1x8x64xf32> to vector<8x64xf32>
    %87 = vector.shape_cast %84 : vector<8x64xf32> to vector<1x1x8x64xf32>
    tpu.vector_store %arg7[%c0_100, %c4_101, %c0_102, %c0_103], %87 {strides = array<i32>} : memref<1x8x8x64xf32, #tpu.memory_space<vmem>>, vector<1x1x8x64xf32>,
    %c0_104 = arith.constant 0 : index
    %c5_105 = arith.constant 5 : index
    %c0_106 = arith.constant 0 : index
    %c0_107 = arith.constant 0 : index
    %c0_108 = arith.constant 0 : index
    %88 = vector.load %arg2[%c0_104, %c5_105, %c0_106, %c0_107, %c0_108] : memref<1x8x2x9x128xf32, #tpu.memory_space<vmem>>, vector<1x1x1x9x128xf32>
    %89 = vector.shape_cast %88 : vector<1x1x1x9x128xf32> to vector<9x128xf32>
    %c0_109 = arith.constant 0 : index
    %c5_110 = arith.constant 5 : index
    %c1_111 = arith.constant 1 : index
    %c0_112 = arith.constant 0 : index
    %c0_113 = arith.constant 0 : index
    %90 = vector.load %arg2[%c0_109, %c5_110, %c1_111, %c0_112, %c0_113] : memref<1x8x2x9x128xf32, #tpu.memory_space<vmem>>, vector<1x1x1x9x128xf32>
    %91 = vector.shape_cast %90 : vector<1x1x1x9x128xf32> to vector<9x128xf32>
    %c0_114 = arith.constant 0 : index
    %c6 = arith.constant 6 : index
    %c0_115 = arith.constant 0 : index
    %c0_116 = arith.constant 0 : index
    %c0_117 = arith.constant 0 : index
    %92 = vector.load %arg2[%c0_114, %c6, %c0_115, %c0_116, %c0_117] : memref<1x8x2x9x128xf32, #tpu.memory_space<vmem>>, vector<1x1x1x9x128xf32>
    %93 = vector.shape_cast %92 : vector<1x1x1x9x128xf32> to vector<9x128xf32>
    %94 = tpu.concatenate %89, %91, %93 in 1 : vector<9x128xf32>, vector<9x128xf32>, vector<9x128xf32> -> vector<9x384xf32>
    %cst_118 = arith.constant dense<0.000000e+00> : vector<9x64xf32>
    %95 = tpu.matmul %94, %0, %cst_118 {dimension_numbers = #tpu.dot_dimension_numbers<[1], [0], [0], [1], [0, 0, 1, 1], [], []>} : vector<9x384xf32>, vector<384x64xf32>, vector<9x64xf32> -> vector<9x64xf32>
    %cst_119 = arith.constant dense<0.000000e+00> : vector<9x64xf32>
    %96 = tpu.matmul %94, %1, %cst_119 {dimension_numbers = #tpu.dot_dimension_numbers<[1], [0], [0], [1], [0, 0, 1, 1], [], []>} : vector<9x384xf32>, vector<384x64xf32>, vector<9x64xf32> -> vector<9x64xf32>
    %97 = vector.extract_strided_slice %95 {offsets = [0, 0], sizes = [8, 64], strides = [1, 1]} : vector<9x64xf32> to vector<8x64xf32>
    %98 = vector.extract_strided_slice %96 {offsets = [1, 0], sizes = [8, 64], strides = [1, 1]} : vector<9x64xf32> to vector<8x64xf32>
    %99 = arith.addf %97, %98 : vector<8x64xf32>
    %100 = vector.broadcast %2 : vector<1x64xf32> to vector<8x64xf32>
    %101 = arith.addf %99, %100 : vector<8x64xf32>
    %c0_120 = arith.constant 0 : index
    %c5_121 = arith.constant 5 : index
    %c0_122 = arith.constant 0 : index
    %c0_123 = arith.constant 0 : index
    %102 = vector.load %arg7[%c0_120, %c5_121, %c0_122, %c0_123] : memref<1x8x8x64xf32, #tpu.memory_space<vmem>>, vector<1x1x8x64xf32>
    %103 = vector.shape_cast %102 : vector<1x1x8x64xf32> to vector<8x64xf32>
    %104 = vector.shape_cast %101 : vector<8x64xf32> to vector<1x1x8x64xf32>
    tpu.vector_store %arg7[%c0_120, %c5_121, %c0_122, %c0_123], %104 {strides = array<i32>} : memref<1x8x8x64xf32, #tpu.memory_space<vmem>>, vector<1x1x8x64xf32>,
    %c0_124 = arith.constant 0 : index
    %c6_125 = arith.constant 6 : index
    %c0_126 = arith.constant 0 : index
    %c0_127 = arith.constant 0 : index
    %c0_128 = arith.constant 0 : index
    %105 = vector.load %arg2[%c0_124, %c6_125, %c0_126, %c0_127, %c0_128] : memref<1x8x2x9x128xf32, #tpu.memory_space<vmem>>, vector<1x1x1x9x128xf32>
    %106 = vector.shape_cast %105 : vector<1x1x1x9x128xf32> to vector<9x128xf32>
    %c0_129 = arith.constant 0 : index
    %c6_130 = arith.constant 6 : index
    %c1_131 = arith.constant 1 : index
    %c0_132 = arith.constant 0 : index
    %c0_133 = arith.constant 0 : index
    %107 = vector.load %arg2[%c0_129, %c6_130, %c1_131, %c0_132, %c0_133] : memref<1x8x2x9x128xf32, #tpu.memory_space<vmem>>, vector<1x1x1x9x128xf32>
    %108 = vector.shape_cast %107 : vector<1x1x1x9x128xf32> to vector<9x128xf32>
    %c0_134 = arith.constant 0 : index
    %c7 = arith.constant 7 : index
    %c0_135 = arith.constant 0 : index
    %c0_136 = arith.constant 0 : index
    %c0_137 = arith.constant 0 : index
    %109 = vector.load %arg2[%c0_134, %c7, %c0_135, %c0_136, %c0_137] : memref<1x8x2x9x128xf32, #tpu.memory_space<vmem>>, vector<1x1x1x9x128xf32>
    %110 = vector.shape_cast %109 : vector<1x1x1x9x128xf32> to vector<9x128xf32>
    %111 = tpu.concatenate %106, %108, %110 in 1 : vector<9x128xf32>, vector<9x128xf32>, vector<9x128xf32> -> vector<9x384xf32>
    %cst_138 = arith.constant dense<0.000000e+00> : vector<9x64xf32>
    %112 = tpu.matmul %111, %0, %cst_138 {dimension_numbers = #tpu.dot_dimension_numbers<[1], [0], [0], [1], [0, 0, 1, 1], [], []>} : vector<9x384xf32>, vector<384x64xf32>, vector<9x64xf32> -> vector<9x64xf32>
    %cst_139 = arith.constant dense<0.000000e+00> : vector<9x64xf32>
    %113 = tpu.matmul %111, %1, %cst_139 {dimension_numbers = #tpu.dot_dimension_numbers<[1], [0], [0], [1], [0, 0, 1, 1], [], []>} : vector<9x384xf32>, vector<384x64xf32>, vector<9x64xf32> -> vector<9x64xf32>
    %114 = vector.extract_strided_slice %112 {offsets = [0, 0], sizes = [8, 64], strides = [1, 1]} : vector<9x64xf32> to vector<8x64xf32>
    %115 = vector.extract_strided_slice %113 {offsets = [1, 0], sizes = [8, 64], strides = [1, 1]} : vector<9x64xf32> to vector<8x64xf32>
    %116 = arith.addf %114, %115 : vector<8x64xf32>
    %117 = vector.broadcast %2 : vector<1x64xf32> to vector<8x64xf32>
    %118 = arith.addf %116, %117 : vector<8x64xf32>
    %c0_140 = arith.constant 0 : index
    %c6_141 = arith.constant 6 : index
    %c0_142 = arith.constant 0 : index
    %c0_143 = arith.constant 0 : index
    %119 = vector.load %arg7[%c0_140, %c6_141, %c0_142, %c0_143] : memref<1x8x8x64xf32, #tpu.memory_space<vmem>>, vector<1x1x8x64xf32>
    %120 = vector.shape_cast %119 : vector<1x1x8x64xf32> to vector<8x64xf32>
    %121 = vector.shape_cast %118 : vector<8x64xf32> to vector<1x1x8x64xf32>
    tpu.vector_store %arg7[%c0_140, %c6_141, %c0_142, %c0_143], %121 {strides = array<i32>} : memref<1x8x8x64xf32, #tpu.memory_space<vmem>>, vector<1x1x8x64xf32>,
    %c0_144 = arith.constant 0 : index
    %c7_145 = arith.constant 7 : index
    %c0_146 = arith.constant 0 : index
    %c0_147 = arith.constant 0 : index
    %c0_148 = arith.constant 0 : index
    %122 = vector.load %arg2[%c0_144, %c7_145, %c0_146, %c0_147, %c0_148] : memref<1x8x2x9x128xf32, #tpu.memory_space<vmem>>, vector<1x1x1x9x128xf32>
    %123 = vector.shape_cast %122 : vector<1x1x1x9x128xf32> to vector<9x128xf32>
    %c0_149 = arith.constant 0 : index
    %c7_150 = arith.constant 7 : index
    %c1_151 = arith.constant 1 : index
    %c0_152 = arith.constant 0 : index
    %c0_153 = arith.constant 0 : index
    %124 = vector.load %arg2[%c0_149, %c7_150, %c1_151, %c0_152, %c0_153] : memref<1x8x2x9x128xf32, #tpu.memory_space<vmem>>, vector<1x1x1x9x128xf32>
    %125 = vector.shape_cast %124 : vector<1x1x1x9x128xf32> to vector<9x128xf32>
    %c0_154 = arith.constant 0 : index
    %c0_155 = arith.constant 0 : index
    %c0_156 = arith.constant 0 : index
    %c0_157 = arith.constant 0 : index
    %c0_158 = arith.constant 0 : index
    %126 = vector.load %arg3[%c0_154, %c0_155, %c0_156, %c0_157, %c0_158] : memref<1x1x1x9x128xf32, #tpu.memory_space<vmem>>, vector<1x1x1x9x128xf32>
    %127 = vector.shape_cast %126 : vector<1x1x1x9x128xf32> to vector<9x128xf32>
    %128 = tpu.concatenate %123, %125, %127 in 1 : vector<9x128xf32>, vector<9x128xf32>, vector<9x128xf32> -> vector<9x384xf32>
    %cst_159 = arith.constant dense<0.000000e+00> : vector<9x64xf32>
    %129 = tpu.matmul %128, %0, %cst_159 {dimension_numbers = #tpu.dot_dimension_numbers<[1], [0], [0], [1], [0, 0, 1, 1], [], []>} : vector<9x384xf32>, vector<384x64xf32>, vector<9x64xf32> -> vector<9x64xf32>
    %cst_160 = arith.constant dense<0.000000e+00> : vector<9x64xf32>
    %130 = tpu.matmul %128, %1, %cst_160 {dimension_numbers = #tpu.dot_dimension_numbers<[1], [0], [0], [1], [0, 0, 1, 1], [], []>} : vector<9x384xf32>, vector<384x64xf32>, vector<9x64xf32> -> vector<9x64xf32>
    %131 = vector.extract_strided_slice %129 {offsets = [0, 0], sizes = [8, 64], strides = [1, 1]} : vector<9x64xf32> to vector<8x64xf32>
    %132 = vector.extract_strided_slice %130 {offsets = [1, 0], sizes = [8, 64], strides = [1, 1]} : vector<9x64xf32> to vector<8x64xf32>
    %133 = arith.addf %131, %132 : vector<8x64xf32>
    %134 = vector.broadcast %2 : vector<1x64xf32> to vector<8x64xf32>
    %135 = arith.addf %133, %134 : vector<8x64xf32>
    %c0_161 = arith.constant 0 : index
    %c7_162 = arith.constant 7 : index
    %c0_163 = arith.constant 0 : index
    %c0_164 = arith.constant 0 : index
    %136 = vector.load %arg7[%c0_161, %c7_162, %c0_163, %c0_164] : memref<1x8x8x64xf32, #tpu.memory_space<vmem>>, vector<1x1x8x64xf32>
    %137 = vector.shape_cast %136 : vector<1x1x8x64xf32> to vector<8x64xf32>
    %138 = vector.shape_cast %135 : vector<8x64xf32> to vector<1x1x8x64xf32>
    tpu.vector_store %arg7[%c0_161, %c7_162, %c0_163, %c0_164], %138 {strides = array<i32>} : memref<1x8x8x64xf32, #tpu.memory_space<vmem>>, vector<1x1x8x64xf32>,
    return
  }
  func.func @transform_0(%arg0: i32, %arg1: i32) -> (i32, i32, i32, i32, i32) {
    %c0_i32 = arith.constant 0 : i32
    %c0_i32_0 = arith.constant 0 : i32
    %c0_i32_1 = arith.constant 0 : i32
    %c0_i32_2 = arith.constant 0 : i32
    return %arg0, %arg1, %c0_i32, %c0_i32_0, %c0_i32_1 : i32, i32, i32, i32, i32
  }
  func.func @transform_1(%arg0: i32, %arg1: i32) -> (i32, i32, i32, i32, i32) {
    %c1_i32 = arith.constant 1 : i32
    %0 = arith.addi %arg1, %c1_i32 : i32
    %c8_i32 = arith.constant 8 : i32
    %1 = arith.muli %c8_i32, %0 : i32
    %c0_i32 = arith.constant 0 : i32
    %c0_i32_0 = arith.constant 0 : i32
    %c0_i32_1 = arith.constant 0 : i32
    %c0_i32_2 = arith.constant 0 : i32
    return %arg0, %1, %c0_i32, %c0_i32_0, %c0_i32_1 : i32, i32, i32, i32, i32
  }
  func.func @transform_2(%arg0: i32, %arg1: i32) -> (i32, i32) {
    %c0_i32 = arith.constant 0 : i32
    %c0_i32_0 = arith.constant 0 : i32
    %c0_i32_1 = arith.constant 0 : i32
    return %c0_i32, %c0_i32_0 : i32, i32
  }
  func.func @transform_3(%arg0: i32, %arg1: i32) -> (i32, i32) {
    %c0_i32 = arith.constant 0 : i32
    %c0_i32_0 = arith.constant 0 : i32
    %c0_i32_1 = arith.constant 0 : i32
    return %c0_i32, %c0_i32_0 : i32, i32
  }
  func.func @transform_4(%arg0: i32, %arg1: i32) -> (i32, i32) {
    %c0_i32 = arith.constant 0 : i32
    %c0_i32_0 = arith.constant 0 : i32
    %c0_i32_1 = arith.constant 0 : i32
    return %c0_i32, %c0_i32_0 : i32, i32
  }
  func.func @transform_5(%arg0: i32, %arg1: i32) -> (i32, i32, i32, i32) {
    %c0_i32 = arith.constant 0 : i32
    %c0_i32_0 = arith.constant 0 : i32
    %c0_i32_1 = arith.constant 0 : i32
    return %arg0, %arg1, %c0_i32, %c0_i32_0 : i32, i32, i32, i32
  }
}

</mosaic_0001>

<bundles_post_ra>
// kernel: downsample_forward.1
= control target key start
LH: loop header
LB: loop body
LE: loop exit
PB: predicated region body
PF: predicated region fallthrough
CT: control target
= control target key end

     0   :  { %10 = vsyncpa [#allocation3], 0  ;;  %s4148_s0 = inlined_call_operand.vmem [shape: f32[2,9,2,9,128], index: 0, kind: input, shape index: {}, may-alias: {0,1}]   ;;  %s4149_s1 = inlined_call_operand.vmem [shape: f32[2,9,2,9,128], index: 1, kind: input, shape index: {}, may-alias: {0,1}]   ;;  %s4150_s2 = inlined_call_operand.vmem [shape: f32[384,64], index: 2, kind: input, shape index: {}]   ;;  %s4151_s3 = inlined_call_operand.vmem [shape: f32[384,64], index: 3, kind: input, shape index: {}]   ;;  %s4152_s4 = inlined_call_operand.vmem [shape: f32[1,64], index: 4, kind: input, shape index: {}]   ;;  %s4153_s5 = inlined_call_operand.hbm [shape: f32[2,8,8,64], index: 5, kind: output, shape index: {}]  }
   0x1   :  { %12 = vsyncpa [#allocation3 + $0x1], 0  ;;  %s2117_s18 = smov 0   ;;  %s2119_s19 = smov 0  }
   0x2   :  { %s2121_s20 = smov 0   ;;  %s2123_s21 = smov 0  }
   0x3   :  { %s2125_s22 = smov 0   ;;  %s2127_s23 = smov 0  }
   0x4 LB: > { %s1780_s24 = sadd.s32 4294967295, %s2083_s23   ;;  %s1781_s25 = sadd.s32 4294967294, %s2083_s23   ;;  %s2083_s23 = sphi %s2127_s23, %s18_s23   ;;  %s2079_s22 = sphi %s2125_s22, %s4725_s22   ;;  %s2075_s21 = sphi %s2123_s21, %s4724_s21   ;;  %s2071_s20 = sphi %s2121_s20, %s4723_s20   ;;  %s2067_s19 = sphi %s2119_s19, %s4722_s19   ;;  %s2063_s18 = sphi %s2117_s18, %s4721_s18  }
   0x5   : > { %s30_s26 = sadd.s32 1, %s2079_s22  ;;  %s162_s27 = sadd.s32 1, %s2071_s20 }
   0x6   : > { %p32_p0 = scmp.ge.s32.totalorder %s30_s26, 2  ;;  %p172_p1 = scmp.ne.s32.totalorder %s2071_s20, %s2067_s19 }
   0x7   : > { %p173_p2 = scmp.eq.s32.totalorder %s1780_s24, 1  ;;  %p178_p3 = scmp.ne.s32.totalorder %s2067_s19, %s2063_s18 }
   0x8   : > { %s4727_s26 = smov (%p32_p0, %s30_s26), 0  ;;  %p179_p5 = scmp.eq.s32.totalorder %s1781_s25, 1 }
   0x9   : > { %p2157_p4 = por %p173_p2, %p172_p1  ;;  %s157_s29 = ssub.s32 %s2079_s22, %s4727_s26 }
   0xa   : > { %p1784_p6 = scmp.ge.s32.totalorder %s2083_s23, 1  ;;  %p160_p7 = scmp.eq.s32.totalorder %s157_s29, 0 }
   0xb   : > { %p2164_p8 = por %p179_p5, %p178_p3  ;;  %p248_p9 = scmp.lt.s32.totalorder %s2083_s23, 3 }
   0xc   : > { %s2170_s6 = scalar_select %p160_p7, %s2071_s20, %s162_s27  }
   0xd   : > { %p249_p10 = pnand %p1784_p6, %p248_p9 }
   0xf   : > { %252 = sbr.rel (%p249_p10) target bundleno = 615 (0x267), region = 40 }
  0x14   : > { %v2175_v0 = vld [vmem:[%s4150_s2 + $0x78] sm:$0xff]  ;;  %v2185_v2 = vld [vmem:[%s4150_s2 + $0x70] sm:$0xff]  ;;  %p305_p11 = scmp.lt.s32.totalorder %s2075_s21, 1  ;;  %v2210_v6 = vld [vmem:[%s4150_s2 + $0x68] sm:$0xff]  ;;  %s295_s13 = sand.u32 1, %s2067_s19   ;;  %vm577_vm0 = vcmask 1046528  }
  0x15   : > { %4420 = vst [vmem:[#allocation5_spill] sm:$0xff] %v2175_v0  ;;  %v2180_v1 = vld [vmem:[%s4150_s2 + $0x178] sm:$0xff]  ;;  %440 = vmatpush.msra.mxu0 %v2175_v0  ;;  %v2198_v4 = vld [vmem:[%s4150_s2 + $0x170] sm:$0xff]  ;;  %v2220_v8 = vld [vmem:[%s4150_s2 + $0x168] sm:$0xff]  ;;  %s1785_s15 = sshll.u32 %s295_s13, 6  ;;  %vm587_vm1 = vcmask 523264  }
  0x16   : > { %4421 = vst [vmem:[#allocation6_spill] sm:$0xff] %v2180_v1  ;;  %484 = vmatpush.msra.mxu2 %v2180_v1  ;;  %v2193_v3 = vld [vmem:[%s4150_s2 + $0xf8] sm:$0xff]  ;;  %v2215_v7 = vld [vmem:[%s4150_s2 + $0xf0] sm:$0xff]  ;;  %v2232_v10 = vld [vmem:[%s4150_s2 + $0xe8] sm:$0xff]  ;;  %s2237_s14 = scalar_select %p305_p11, %s2075_s21, 1 }
  0x17   : > { %4422 = vst [vmem:[#allocation7_spill] sm:$0xff] %v2185_v2  ;;  %v2203_v5 = vld [vmem:[%s4151_s3 + $0x78] sm:$0xff]  ;;  %462 = vmatpush.msra.mxu1 %v2193_v3  ;;  %441 = vmatpush.msra.mxu0 %v2185_v2  ;;  %v2227_v9 = vld [vmem:[%s4151_s3 + $0x70] sm:$0xff]  ;;  %v2244_v11 = vld [vmem:[%s4150_s2 + $0x60] sm:$0xff]  ;;  %s3133_s10 = scalar_lea.vmem [#allocation2], %s1785_s15  ;;  %s1846_s8 = sshll.u32 %s2075_s21, 6 }
  0x18   : > { %4423 = vst [vmem:[#allocation8_spill] sm:$0xff] %v2193_v3  ;;  %506 = vmatpush.msra.mxu3 %v2203_v5  ;;  %485 = vmatpush.msra.mxu2 %v2198_v4  ;;  %v2249_v12 = vld [vmem:[%s4150_s2 + $0x160] sm:$0xff]  ;;  %v2254_v13 = vld [vmem:[%s4151_s3 + $0x68] sm:$0xff]  ;;  %v2273_v16 = vld [vmem:[%s4150_s2 + $0x58] sm:$0xff]  ;;  %s1847_s12 = smul.u32 288, %s2237_s14  ;;  %s1673_s17 = scalar_lea.hbm %s4153_s5, %s1846_s8 }
  0x19   : > { %4424 = vst [vmem:[#allocation9_spill] sm:$0xff] %v2198_v4  ;;  %463 = vmatpush.msra.mxu1 %v2215_v7  ;;  %442 = vmatpush.msra.mxu0 %v2210_v6  ;;  %v2261_v14 = vld [vmem:[%s4150_s2 + $0xe0] sm:$0xff]  ;;  %v2278_v17 = vld [vmem:[%s4150_s2 + $0x158] sm:$0xff]  ;;  %v2297_v20 = vld [vmem:[%s4150_s2 + $0x50] sm:$0xff]  ;;  %s1674_s24 = sshll.u32 %s3133_s10, 4  ;;  %s1676_s15 = sshll.u32 %s1673_s17, 4  ;;  %s1675_s24 = int_to_ptr.vmem [resolvable:$true] %s1674_s24  ;;  %s1677_s15 = int_to_ptr.hbm [resolvable:$true] %s1676_s15 }
  0x1a   : > { %4425 = vst [vmem:[#allocation10_spill] sm:$0xff] %v2203_v5  ;;  %507 = vmatpush.msra.mxu3 %v2227_v9  ;;  %486 = vmatpush.msra.mxu2 %v2220_v8  ;;  %v2266_v15 = vld [vmem:[%s4151_s3 + $0x60] sm:$0xff]  ;;  %v2285_v18 = vld [vmem:[%s4150_s2 + $0xd8] sm:$0xff]  ;;  %v2302_v21 = vld [vmem:[%s4150_s2 + $0x150] sm:$0xff]  ;;  %s2653_s9 = scalar_lea.vmem %s4148_s0, %s1847_s12  ;;  %s1845_s27 = sadd.s32 256, %s1847_s12 }
  0x1b   : > { %4426 = vst [vmem:[#allocation11_spill] sm:$0xff] %v2210_v6  ;;  %464 = vmatpush.msra.mxu1 %v2232_v10  ;;  %443 = vmatpush.msra.mxu0 %v2244_v11  ;;  %v2290_v19 = vld [vmem:[%s4151_s3 + $0x58] sm:$0xff]  ;;  %v2309_v22 = vld [vmem:[%s4150_s2 + $0xd0] sm:$0xff]  ;;  %v2321_v24 = vld [vmem:[%s4150_s2 + $0x48] sm:$0xff]  ;;  %s4068_s12 = scalar_lea.vmem %s4149_s1, %s1845_s27  ;;  %s1660_s21 = scalar_lea.sflag [#allocation3], %s295_s13 }
  0x1c   : > { %4427 = vst [vmem:[#allocation12_spill] sm:$0xff] %v2215_v7  ;;  %508 = vmatpush.msra.mxu3 %v2254_v13  ;;  %487 = vmatpush.msra.mxu2 %v2249_v12  ;;  %v2314_v23 = vld [vmem:[%s4151_s3 + $0x50] sm:$0xff]  ;;  %v2326_v25 = vld [vmem:[%s4150_s2 + $0x148] sm:$0xff]  ;;  %v2345_v28 = vld [vmem:[%s4150_s2 + $0x40] sm:$0xff]  ;;  %s2019_s25 = sshra.s32 %s1677_s15, 4  ;;  %s2020_s25 = int_to_ptr.hbm [resolvable:$true] %s2019_s25 }
  0x1d   : > { %4428 = vst [vmem:[#allocation13_spill] sm:$0xff] %v2220_v8  ;;  %465 = vmatpush.msra.mxu1 %v2261_v14  ;;  %444 = vmatpush.msra.mxu0 %v2273_v16  ;;  %v2333_v26 = vld [vmem:[%s4150_s2 + $0xc8] sm:$0xff]  ;;  %v2350_v29 = vld [vmem:[%s4150_s2 + $0x140] sm:$0xff]  ;;  %v2369_v32 = vld [vmem:[%s4150_s2 + $0x38] sm:$0xff]  ;;  %s2021_s27 = scalar_lea.hbm %s2020_s25, 64  ;;  %p2026_p1 = scmp.lt.s32.totalorder %s2020_s25, %s4153_s5 }
  0x1e   : > { %4429 = vst [vmem:[#allocation14_spill] sm:$0xff] %v2232_v10  ;;  %509 = vmatpush.msra.mxu3 %v2266_v15  ;;  %488 = vmatpush.msra.mxu2 %v2278_v17  ;;  %v2338_v27 = vld [vmem:[%s4151_s3 + $0x48] sm:$0xff]  ;;  %v2357_v30 = vld [vmem:[%s4150_s2 + $0xc0] sm:$0xff]  ;;  %v2374_v33 = vld [vmem:[%s4150_s2 + $0x138] sm:$0xff]  ;;  %p2022_p12 = scmp.ne.s32.totalorder %s2020_s25, %s2021_s27 }
  0x1f   : > { %4430 = vst [vmem:[#allocation15_spill] sm:$0xff] %v2244_v11  ;;  %466 = vmatpush.msra.mxu1 %v2285_v18  ;;  %445 = vmatpush.msra.mxu0 %v2297_v20  ;;  %v2362_v31 = vld [vmem:[%s4151_s3 + $0x40] sm:$0xff]  ;;  %v2381_v34 = vld [vmem:[%s4150_s2 + $0xb8] sm:$0xff]  ;;  %v2393_v36 = vld [vmem:[%s4150_s2 + $0x30] sm:$0xff] }
  0x20   : > { %4431 = vst [vmem:[#allocation16_spill] sm:$0xff] %v2249_v12  ;;  %510 = vmatpush.msra.mxu3 %v2290_v19  ;;  %489 = vmatpush.msra.mxu2 %v2302_v21  ;;  %v2386_v35 = vld [vmem:[%s4151_s3 + $0x38] sm:$0xff]  ;;  %v2398_v37 = vld [vmem:[%s4150_s2 + $0x130] sm:$0xff]  ;;  %v2417_v40 = vld [vmem:[%s4150_s2 + $0x28] sm:$0xff]  ;;  %p2023_p13 = pnand %p2022_p12, %p2157_p4 }
  0x21   : > { %4432 = vst [vmem:[#allocation17_spill] sm:$0xff] %v2254_v13  ;;  %467 = vmatpush.msra.mxu1 %v2309_v22  ;;  %446 = vmatpush.msra.mxu0 %v2321_v24  ;;  %v2405_v38 = vld [vmem:[%s4150_s2 + $0xb0] sm:$0xff]  ;;  %v2422_v41 = vld [vmem:[%s4150_s2 + $0x128] sm:$0xff]  ;;  %v2441_v44 = vld [vmem:[%s4150_s2 + $0x20] sm:$0xff] }
  0x22   : > { %4433 = vst [vmem:[#allocation18_spill] sm:$0xff] %v2261_v14  ;;  %511 = vmatpush.msra.mxu3 %v2314_v23  ;;  %490 = vmatpush.msra.mxu2 %v2326_v25  ;;  %v2410_v39 = vld [vmem:[%s4151_s3 + $0x30] sm:$0xff]  ;;  %v2429_v42 = vld [vmem:[%s4150_s2 + $0xa8] sm:$0xff]  ;;  %v2446_v45 = vld [vmem:[%s4150_s2 + $0x120] sm:$0xff]  ;;  %p2024_p0 = pneg %p2023_p13 }
  0x23   : > { %4434 = vst [vmem:[#allocation19_spill] sm:$0xff] %v2266_v15  ;;  %468 = vmatpush.msra.mxu1 %v2333_v26  ;;  %447 = vmatpush.msra.mxu0 %v2345_v28  ;;  %v2434_v43 = vld [vmem:[%s4151_s3 + $0x28] sm:$0xff]  ;;  %v2453_v46 = vld [vmem:[%s4150_s2 + $0xa0] sm:$0xff]  ;;  %v2465_v48 = vld [vmem:[%s4150_s2 + $0x18] sm:$0xff] }
  0x24   : > { %4435 = vst [vmem:[#allocation20_spill] sm:$0xff] %v2273_v16  ;;  %512 = vmatpush.msra.mxu3 %v2338_v27  ;;  %491 = vmatpush.msra.mxu2 %v2350_v29  ;;  %v2458_v47 = vld [vmem:[%s4151_s3 + $0x20] sm:$0xff]  ;;  %v2470_v49 = vld [vmem:[%s4150_s2 + $0x118] sm:$0xff]  ;;  %v2489_v52 = vld [vmem:[%s4150_s2 + $0x10] sm:$0xff] }
  0x25   : > { %4436 = vst [vmem:[#allocation21_spill] sm:$0xff] %v2278_v17  ;;  %469 = vmatpush.msra.mxu1 %v2357_v30  ;;  %448 = vmatpush.msra.mxu0 %v2369_v32  ;;  %v2477_v50 = vld [vmem:[%s4150_s2 + $0x98] sm:$0xff]  ;;  %v2494_v53 = vld [vmem:[%s4150_s2 + $0x110] sm:$0xff]  ;;  %v2513_v56 = vld [vmem:[%s4150_s2 + $0x8] sm:$0xff] }
  0x26   : > { %4437 = vst [vmem:[#allocation22_spill] sm:$0xff] %v2285_v18  ;;  %513 = vmatpush.msra.mxu3 %v2362_v31  ;;  %492 = vmatpush.msra.mxu2 %v2374_v33  ;;  %v2482_v51 = vld [vmem:[%s4151_s3 + $0x18] sm:$0xff]  ;;  %v2501_v54 = vld [vmem:[%s4150_s2 + $0x90] sm:$0xff]  ;;  %v2518_v57 = vld [vmem:[%s4150_s2 + $0x108] sm:$0xff] }
  0x27   : > { %4438 = vst [vmem:[#allocation23_spill] sm:$0xff] %v2290_v19  ;;  %470 = vmatpush.msra.mxu1 %v2381_v34  ;;  %449 = vmatpush.msra.mxu0 %v2393_v36  ;;  %v2506_v55 = vld [vmem:[%s4151_s3 + $0x10] sm:$0xff]  ;;  %v2525_v58 = vld [vmem:[%s4150_s2 + $0x88] sm:$0xff]  ;;  %v2537_v60 = vld [vmem:[%s4150_s2] sm:$0xff] }
  0x28   : > { %4439 = vst [vmem:[#allocation24_spill] sm:$0xff] %v2297_v20  ;;  %514 = vmatpush.msra.mxu3 %v2386_v35  ;;  %493 = vmatpush.msra.mxu2 %v2398_v37  ;;  %v2530_v59 = vld [vmem:[%s4151_s3 + $0x8] sm:$0xff]  ;;  %v2542_v61 = vld [vmem:[%s4150_s2 + $0x100] sm:$0xff]  ;;  %v2549_v62 = vld [vmem:[%s4151_s3 + $0xf8] sm:$0xff] }
  0x29   : > { %4440 = vst [vmem:[#allocation25_spill] sm:$0xff] %v2302_v21  ;;  %471 = vmatpush.msra.mxu1 %v2405_v38  ;;  %450 = vmatpush.msra.mxu0 %v2417_v40  ;;  %v2556_v63 = vld [vmem:[%s4150_s2 + $0x80] sm:$0xff] }
  0x2a   : > { %4441 = vst [vmem:[#allocation26_spill] sm:$0xff] %v2309_v22  ;;  %515 = vmatpush.msra.mxu3 %v2410_v39  ;;  %494 = vmatpush.msra.mxu2 %v2422_v41 }
  0x2b   : > { %4442 = vst [vmem:[#allocation27_spill] sm:$0xff] %v2314_v23  ;;  %472 = vmatpush.msra.mxu1 %v2429_v42  ;;  %451 = vmatpush.msra.mxu0 %v2441_v44 }
  0x2c   : > { %4443 = vst [vmem:[#allocation28_spill] sm:$0xff] %v2321_v24  ;;  %516 = vmatpush.msra.mxu3 %v2434_v43  ;;  %495 = vmatpush.msra.mxu2 %v2446_v45 }
  0x2d   : > { %4444 = vst [vmem:[#allocation29_spill] sm:$0xff] %v2326_v25  ;;  %473 = vmatpush.msra.mxu1 %v2453_v46  ;;  %452 = vmatpush.msra.mxu0 %v2465_v48 }
  0x2e   : > { %4445 = vst [vmem:[#allocation30_spill] sm:$0xff] %v2333_v26  ;;  %517 = vmatpush.msra.mxu3 %v2458_v47  ;;  %496 = vmatpush.msra.mxu2 %v2470_v49 }
  0x2f   : > { %4446 = vst [vmem:[#allocation31_spill] sm:$0xff] %v2338_v27  ;;  %474 = vmatpush.msra.mxu1 %v2477_v50  ;;  %453 = vmatpush.msra.mxu0 %v2489_v52 }
  0x30   : > { %4447 = vst [vmem:[#allocation32_spill] sm:$0xff] %v2345_v28  ;;  %518 = vmatpush.msra.mxu3 %v2482_v51  ;;  %497 = vmatpush.msra.mxu2 %v2494_v53 }
  0x31   : > { %4448 = vst [vmem:[#allocation33_spill] sm:$0xff] %v2350_v29  ;;  %475 = vmatpush.msra.mxu1 %v2501_v54  ;;  %454 = vmatpush.msra.mxu0 %v2513_v56 }
  0x32   : > { %4449 = vst [vmem:[#allocation34_spill] sm:$0xff] %v2357_v30  ;;  %519 = vmatpush.msra.mxu3 %v2506_v55  ;;  %498 = vmatpush.msra.mxu2 %v2518_v57 }
  0x33   : > { %4450 = vst [vmem:[#allocation35_spill] sm:$0xff] %v2362_v31  ;;  %476 = vmatpush.msra.mxu1 %v2525_v58  ;;  %455 = vmatpush.msra.mxu0 %v2537_v60 }
  0x34   : > { %4451 = vst [vmem:[#allocation36_spill] sm:$0xff] %v2369_v32  ;;  %520 = vmatpush.msra.mxu3 %v2530_v59  ;;  %499 = vmatpush.msra.mxu2 %v2542_v61 }
  0x35   : > { %4452 = vst [vmem:[#allocation37_spill] sm:$0xff] %v2374_v33  ;;  %529 = vmatpush.msrb.mxu0 %v2549_v62  ;;  %477 = vmatpush.msra.mxu1 %v2556_v63 }
  0x36   : > { %4453 = vst [vmem:[#allocation38_spill] sm:$0xff] %v2381_v34  ;;  %597 = vmatpush.msrb.mxu2 %v2175_v0  ;;  %v2601_v0 = vld [vmem:[%s4151_s3 + $0x168] sm:$0xff] }
  0x37   : > { %4454 = vst [vmem:[#allocation39_spill] sm:$0xff] %v2393_v36 }
  0x38   : > { %4455 = vst [vmem:[#allocation40_spill] sm:$0xff] %v2398_v37  ;;  %598 = vmatpush.msrb.mxu2 %v2185_v2  ;;  %v2615_v2 = vld [vmem:[%s4151_s3 + $0x160] sm:$0xff] }
  0x39   : > { %4456 = vst [vmem:[#allocation41_spill] sm:$0xff] %v2405_v38 }
  0x3a   : > { %4457 = vst [vmem:[#allocation42_spill] sm:$0xff] %v2417_v40  ;;  %599 = vmatpush.msrb.mxu2 %v2210_v6  ;;  %v2630_v6 = vld [vmem:[%s4151_s3 + $0x158] sm:$0xff] }
  0x3b   : > { %4458 = vst [vmem:[#allocation43_spill] sm:$0xff] %v2422_v41 }
  0x3c   : > { %4459 = vst [vmem:[#allocation44_spill] sm:$0xff] %v2429_v42  ;;  %600 = vmatpush.msrb.mxu2 %v2244_v11  ;;  %v2644_v11 = vld [vmem:[%s4151_s3 + $0x150] sm:$0xff] }
  0x3d   : > { %4460 = vst [vmem:[#allocation45_spill] sm:$0xff] %v2441_v44 }
  0x3e   : > { %4461 = vst [vmem:[#allocation46_spill] sm:$0xff] %v2453_v46  ;;  %601 = vmatpush.msrb.mxu2 %v2273_v16  ;;  %v2665_v16 = vld [vmem:[%s4151_s3 + $0x148] sm:$0xff] }
  0x3f   : > { %4462 = vst [vmem:[#allocation47_spill] sm:$0xff] %v2458_v47  ;;  %v2696_v47 = vld [vmem:[%s4151_s3 + $0x138] sm:$0xff] }
  0x40   : > { %4463 = vst [vmem:[#allocation48_spill] sm:$0xff] %v2465_v48  ;;  %602 = vmatpush.msrb.mxu2 %v2297_v20  ;;  %v432_v20 = vld [vmem:[%s2653_s9] sm:$0xff] }
  0x41   : > { %4464 = vst [vmem:[#allocation49_spill] sm:$0xff] %v2470_v49  ;;  %456 = vmatmul.f32.vlgmr.msra.gmra.mxu0 %v432_v20  ;;  %v2740_v49 = vld [vmem:[%s4151_s3 + $0x98] sm:$0xff] }
  0x42   : > { %4465 = vst [vmem:[#allocation50_spill] sm:$0xff] %v2477_v50  ;;  %603 = vmatpush.msrb.mxu2 %v2321_v24  ;;  %v2691_v24 = vld [vmem:[%s4151_s3 + $0xb0] sm:$0xff] }
  0x43   : > { %4466 = vst [vmem:[#allocation51_spill] sm:$0xff] %v2482_v51  ;;  %v2587_v51 = vld [vmem:[%s4151_s3 + $0x170] sm:$0xff] }
  0x44   : > { %4467 = vst [vmem:[#allocation52_spill] sm:$0xff] %v2494_v53  ;;  %v2682_v53 = vld [vmem:[%s4151_s3 + $0xb8] sm:$0xff]  ;;  %604 = vmatpush.msrb.mxu2 %v2345_v28  ;;  %v2709_v28 = vld [vmem:[%s4151_s3 + $0x130] sm:$0xff] }
  0x45   : > { %4468 = vst [vmem:[#allocation53_spill] sm:$0xff] %v2506_v55  ;;  %v2561_v55 = vld [vmem:[%s4151_s3] sm:$0xff] }
  0x46   : > { %4469 = vst [vmem:[#allocation54_spill] sm:$0xff] %v2518_v57  ;;  %v2568_v57 = vld [vmem:[%s4151_s3 + $0xf0] sm:$0xff]  ;;  %521 = vmatpush.msra.mxu3 %v2561_v55  ;;  %605 = vmatpush.msrb.mxu2 %v2369_v32  ;;  %v2723_v32 = vld [vmem:[%s4151_s3 + $0x128] sm:$0xff] }
  0x47   : > { %4470 = vst [vmem:[#allocation55_spill] sm:$0xff] %v2530_v59  ;;  %v2573_v59 = vld [vmem:[%s4151_s3 + $0x178] sm:$0xff]  ;;  %530 = vmatpush.msrb.mxu0 %v2568_v57  ;;  %522 = vmatmul.f32.vlgmr.msra.gmra.mxu3 %v432_v20  ;;  %v2780_v20 = vld [vmem:[%s4151_s3 + $0x80] sm:$0xff] }
  0x48   : > { %4471 = vst [vmem:[#allocation56_spill] sm:$0xff] %v2542_v61  ;;  %v2582_v61 = vld [vmem:[%s4151_s3 + $0xe8] sm:$0xff]  ;;  %552 = vmatpush.msrb.mxu1 %v2573_v59  ;;  %619 = vmatpush.msrb.mxu3 %v2193_v3  ;;  %v2610_v3 = vld [vmem:[%s4151_s3 + $0xd8] sm:$0xff] }
  0x49   : > { %4472 = vst [vmem:[#allocation57_spill] sm:$0xff] %v2561_v55  ;;  %v2596_v55 = vld [vmem:[%s4151_s3 + $0xe0] sm:$0xff]  ;;  %531 = vmatpush.msrb.mxu0 %v2582_v61  ;;  %606 = vmatpush.msrb.mxu2 %v2393_v36  ;;  %v433_v36 = vld [vmem:[%s2653_s9 + $0x8] sm:$0x1] }
  0x4a   : > { %553 = vmatpush.msrb.mxu1 %v2587_v51  ;;  %620 = vmatpush.msrb.mxu3 %v2215_v7  ;;  %v2625_v7 = vld [vmem:[%s4151_s3 + $0xd0] sm:$0xff]  ;;  %4474 = vst [vmem:[#allocation59_spill] sm:$0xff] %v2682_v53 }
  0x4b   : > { %532 = vmatpush.msrb.mxu0 %v2596_v55  ;;  %4475 = vst [vmem:[#allocation60_spill] sm:$0xff] %v2691_v24  ;;  %607 = vmatpush.msrb.mxu2 %v2417_v40  ;;  %v2749_v40 = vld [vmem:[%s4151_s3 + $0x90] sm:$0xff] }
  0x4c   : > { %554 = vmatpush.msrb.mxu1 %v2601_v0  ;;  %621 = vmatpush.msrb.mxu3 %v2232_v10  ;;  %v2639_v10 = vld [vmem:[%s4151_s3 + $0xc8] sm:$0xff]  ;;  %4476 = vst [vmem:[#allocation61_spill] sm:$0xff] %v2696_v47 }
  0x4d   : > { %533 = vmatpush.msrb.mxu0 %v2610_v3  ;;  %4478 = vst [vmem:[#allocation63_spill] sm:$0xff] %v2709_v28  ;;  %608 = vmatpush.msrb.mxu2 %v2441_v44  ;;  %v2756_v44 = vld [vmem:[%s4151_s3 + $0x118] sm:$0xff] }
  0x4e   : > { %555 = vmatpush.msrb.mxu1 %v2615_v2  ;;  %622 = vmatpush.msrb.mxu3 %v2261_v14  ;;  %v2660_v14 = vld [vmem:[%s4151_s3 + $0xc0] sm:$0xff]  ;;  %4480 = vst [vmem:[#allocation65_spill] sm:$0xff] %v2723_v32 }
  0x4f   : > { %534 = vmatpush.msrb.mxu0 %v2625_v7  ;;  %4482 = vst [vmem:[#allocation67_spill] sm:$0xff] %v2740_v49  ;;  %609 = vmatpush.msrb.mxu2 %v2465_v48  ;;  %v2768_v48 = vld [vmem:[%s4151_s3 + $0x110] sm:$0xff] }
  0x50   : > { %556 = vmatpush.msrb.mxu1 %v2630_v6  ;;  %623 = vmatpush.msrb.mxu3 %v2285_v18  ;;  %v2675_v18 = vld [vmem:[%s4151_s3 + $0x140] sm:$0xff]  ;;  %4483 = vst [vmem:[#allocation68_spill] sm:$0xff] %v2749_v40 }
  0x51   : > { %535 = vmatpush.msrb.mxu0 %v2639_v10  ;;  %4473 = vst [vmem:[#allocation58_spill] sm:$0xff] %v2675_v18  ;;  %610 = vmatpush.msrb.mxu2 %v2489_v52 }
  0x52   : > { %557 = vmatpush.msrb.mxu1 %v2644_v11  ;;  %624 = vmatpush.msrb.mxu3 %v2309_v22  ;;  %v1788_v22 = vld [vmem:[%s2653_s9 + $0x10] sm:$0xff]  ;;  %4484 = vst [vmem:[#allocation69_spill] sm:$0xff] %v2756_v44 }
  0x53   : > { %536 = vmatpush.msrb.mxu0 %v2660_v14  ;;  %478 = vmatmul.f32.vlgmr.msra.gmra.mxu1 %v1788_v22  ;;  %4486 = vst [vmem:[#allocation71_spill] sm:$0xff] %v2768_v48 }
  0x54   : > { %558 = vmatpush.msrb.mxu1 %v2665_v16  ;;  %625 = vmatpush.msrb.mxu3 %v2333_v26  ;;  %v2704_v26 = vld [vmem:[%s4151_s3 + $0xa8] sm:$0xff] }
  0x55   : > { %537 = vmatpush.msrb.mxu0 %v2682_v53  ;;  %4477 = vst [vmem:[#allocation62_spill] sm:$0xff] %v2704_v26  ;;  %611 = vmatpush.msrb.mxu2 %v2513_v56 }
  0x56   : > { %559 = vmatpush.msrb.mxu1 %v2675_v18  ;;  %626 = vmatpush.msrb.mxu3 %v2357_v30  ;;  %v2718_v30 = vld [vmem:[%s4151_s3 + $0xa0] sm:$0xff] }
  0x57   : > { %538 = vmatpush.msrb.mxu0 %v2691_v24  ;;  %4479 = vst [vmem:[#allocation64_spill] sm:$0xff] %v2718_v30  ;;  %612 = vmatpush.msrb.mxu2 %v2537_v60 }
  0x58   : > { %560 = vmatpush.msrb.mxu1 %v2696_v47  ;;  %627 = vmatpush.msrb.mxu3 %v2381_v34  ;;  %v2733_v34 = vld [vmem:[%s4151_s3 + $0x120] sm:$0xff] }
  0x59   : > { %539 = vmatpush.msrb.mxu0 %v2704_v26  ;;  %4481 = vst [vmem:[#allocation66_spill] sm:$0xff] %v2733_v34  ;;  %525 = vmatmul.f32.gmra.mxu3 %v433_v36 }
  0x5a   : > { %561 = vmatpush.msrb.mxu1 %v2709_v28  ;;  %628 = vmatpush.msrb.mxu3 %v2405_v38  ;;  %v1789_v38 = vld [vmem:[%s2653_s9 + $0x18] sm:$0x1] }
  0x5b   : > { %540 = vmatpush.msrb.mxu0 %v2718_v30  ;;  %481 = vmatmul.f32.gmra.mxu1 %v1789_v38 }
  0x5c   : > { %562 = vmatpush.msrb.mxu1 %v2723_v32  ;;  %629 = vmatpush.msrb.mxu3 %v2429_v42  ;;  %v2762_v42 = vld [vmem:[%s4151_s3 + $0x88] sm:$0xff] }
  0x5d   : > { %459 = vmatmul.f32.gmra.mxu0 %v433_v36  ;;  %4485 = vst [vmem:[#allocation70_spill] sm:$0xff] %v2762_v42  ;;  %v1794_v36 = vld [vmem:[%s2653_s9 + $0x30] sm:$0xff] }
  0x5e   : > { %563 = vmatpush.msrb.mxu1 %v2733_v34  ;;  %541 = vmatpush.msrb.mxu0 %v2740_v49  ;;  %v2773_v34 = vld [vmem:[%s2653_s9 + $0x20] sm:$0xff] }
  0x5f   : > { %630 = vmatpush.msrb.mxu3 %v2453_v46  ;;  %v2785_v46 = vld [vmem:[%s4151_s3 + $0x108] sm:$0xff]  ;;  %500 = vmatmul.f32.vlgmr.msra.gmra.mxu2 %v2773_v34 }
  0x60   : > { %542 = vmatpush.msrb.mxu0 %v2749_v40  ;;  %564 = vmatpush.msrb.mxu1 %v2756_v44  ;;  %4487 = vst [vmem:[#allocation72_spill] sm:$0xff] %v2785_v46 }
  0x61   : > { %631 = vmatpush.msrb.mxu3 %v2477_v50  ;;  %v2796_v50 = vld [vmem:[%s4151_s3 + $0x100] sm:$0xff]  ;;  %686 = vmatpush.msra.mxu2 %v2549_v62 }
  0x62   : > { %543 = vmatpush.msrb.mxu0 %v2762_v42  ;;  %565 = vmatpush.msrb.mxu1 %v2768_v48  ;;  %4488 = vst [vmem:[#allocation73_spill] sm:$0xff] %v2796_v50 }
  0x63   : > { %632 = vmatpush.msrb.mxu3 %v2501_v54  ;;  %687 = vmatpush.msra.mxu2 %v2568_v57 }
  0x64   : > { %544 = vmatpush.msrb.mxu0 %v2780_v20  ;;  %566 = vmatpush.msrb.mxu1 %v2785_v46 }
  0x65   : > { %633 = vmatpush.msrb.mxu3 %v2525_v58  ;;  %545 = vmatmul.f32.vlgmr.msrb.gmra.mxu0 %v1788_v22  ;;  %v1791_v22 = vld [vmem:[%s2653_s9 + $0x28] sm:$0x1] }
  0x66   : > { %641 = vmatpush.msra.mxu0 %v2180_v1  ;;  %567 = vmatpush.msrb.mxu1 %v2796_v50 }
  0x67   : > { %634 = vmatpush.msrb.mxu3 %v2556_v63  ;;  %568 = vmatmul.f32.vlgmr.msrb.gmra.mxu1 %v2773_v34 }
  0x68   : > { %642 = vmatpush.msra.mxu0 %v2198_v4  ;;  %663 = vmatpush.msra.mxu1 %v2203_v5 }
  0x69   : > { %709 = vmatpush.msra.mxu3 %v2573_v59  ;;  %688 = vmatpush.msra.mxu2 %v2582_v61 }
  0x6a   : > { %643 = vmatpush.msra.mxu0 %v2220_v8  ;;  %664 = vmatpush.msra.mxu1 %v2227_v9 }
  0x6b   : > { %710 = vmatpush.msra.mxu3 %v2587_v51  ;;  %689 = vmatpush.msra.mxu2 %v2596_v55 }
  0x6c   : > { %644 = vmatpush.msra.mxu0 %v2249_v12  ;;  %665 = vmatpush.msra.mxu1 %v2254_v13 }
  0x6d   : > { %711 = vmatpush.msra.mxu3 %v2601_v0  ;;  %503 = vmatmul.f32.gmra.mxu2 %v1791_v22 }
  0x6e   : > { %548 = vmatmul.f32.gmra.mxu0 %v1789_v38  ;;  %666 = vmatpush.msra.mxu1 %v2266_v15  ;;  %v1793_v38 = vld [vmem:[%s2653_s9 + $0x28] sm:$0x1] }
  0x6f   : > { %645 = vmatpush.msra.mxu0 %v2278_v17  ;;  %690 = vmatpush.msra.mxu2 %v2610_v3 }
  0x70   : > { %712 = vmatpush.msra.mxu3 %v2615_v2  ;;  %571 = vmatmul.f32.gmra.mxu1 %v1791_v22  ;;  %v4489_v22 = vld [vmem:[#allocation49_spill] sm:$0xff] }
  0x71   : > { %646 = vmatpush.msra.mxu0 %v2302_v21  ;;  %667 = vmatpush.msra.mxu1 %v2290_v19 }
  0x72   : > { %691 = vmatpush.msra.mxu2 %v2625_v7  ;;  %713 = vmatpush.msra.mxu3 %v2630_v6 }
  0x73   : > { %647 = vmatpush.msra.mxu0 %v2326_v25  ;;  %668 = vmatpush.msra.mxu1 %v2314_v23 }
  0x74   : > { %692 = vmatpush.msra.mxu2 %v2639_v10  ;;  %714 = vmatpush.msra.mxu3 %v2644_v11 }
  0x75   : > { %648 = vmatpush.msra.mxu0 %v2350_v29  ;;  %669 = vmatpush.msra.mxu1 %v2338_v27 }
  0x76   : > { %693 = vmatpush.msra.mxu2 %v2660_v14  ;;  %715 = vmatpush.msra.mxu3 %v2665_v16 }
  0x77   : > { %613 = vmatmul.f32.vlgmr.msrb.gmra.mxu2 %v2773_v34  ;;  %649 = vmatpush.msra.mxu0 %v2374_v33 }
  0x78   : > { %670 = vmatpush.msra.mxu1 %v2362_v31  ;;  %694 = vmatpush.msra.mxu2 %v2682_v53  ;;  %v4493_v53 = vld [vmem:[#allocation51_spill] sm:$0xff] }
  0x79   : > { %716 = vmatpush.msra.mxu3 %v2675_v18  ;;  %650 = vmatpush.msra.mxu0 %v2398_v37  ;;  %v4499_v18 = vld [vmem:[#allocation57_spill] sm:$0xff] }
  0x7a   : > { %635 = vmatmul.f32.vlgmr.msrb.gmra.mxu3 %v1794_v36  ;;  %671 = vmatpush.msra.mxu1 %v2386_v35 }
  0x7b   : > { %695 = vmatpush.msra.mxu2 %v2691_v24  ;;  %717 = vmatpush.msra.mxu3 %v2696_v47  ;;  %v1795_v47 = vld [vmem:[%s2653_s9 + $0x38] sm:$0x1]  ;;  %v4490_v24 = vld [vmem:[#allocation47_spill] sm:$0xff] }
  0x7c   : > { %651 = vmatpush.msra.mxu0 %v2422_v41  ;;  %672 = vmatpush.msra.mxu1 %v2410_v39 }
  0x7d   : > { %696 = vmatpush.msra.mxu2 %v2704_v26  ;;  %718 = vmatpush.msra.mxu3 %v2709_v28  ;;  %v4491_v26 = vld [vmem:[#allocation66_spill] sm:$0xff]  ;;  %v4492_v28 = vld [vmem:[#allocation52_spill] sm:$0xff] }
  0x7e   : > { %652 = vmatpush.msra.mxu0 %v2446_v45  ;;  %673 = vmatpush.msra.mxu1 %v2434_v43 }
  0x7f   : > { %697 = vmatpush.msra.mxu2 %v2718_v30  ;;  %719 = vmatpush.msra.mxu3 %v2723_v32  ;;  %v4494_v32 = vld [vmem:[#allocation54_spill] sm:$0xff]  ;;  %v4495_v30 = vld [vmem:[#allocation53_spill] sm:$0xff] }
  0x80   : > { %616 = vmatmul.f32.gmra.mxu2 %v1793_v38  ;;  %653 = vmatpush.msra.mxu0 %v4489_v22 }
  0x81   : > { %674 = vmatpush.msra.mxu1 %v4490_v24  ;;  %698 = vmatpush.msra.mxu2 %v2740_v49  ;;  %v4496_v49 = vld [vmem:[#allocation56_spill] sm:$0xff] }
  0x82   : > { %720 = vmatpush.msra.mxu3 %v4491_v26  ;;  %654 = vmatpush.msra.mxu0 %v4492_v28  ;;  %v4497_v26 = vld [vmem:[#allocation55_spill] sm:$0xff] }
  0x83   : > { %638 = vmatmul.f32.gmra.mxu3 %v1795_v47  ;;  %675 = vmatpush.msra.mxu1 %v4493_v53 }
  0x84   : > { %699 = vmatpush.msra.mxu2 %v2749_v40  ;;  %721 = vmatpush.msra.mxu3 %v2756_v44  ;;  %v4498_v40 = vld [vmem:[#allocation5_spill] sm:$0xff] }
  0x85   : > { %655 = vmatpush.msra.mxu0 %v4494_v32  ;;  %676 = vmatpush.msra.mxu1 %v4495_v30  ;;  %v2872_v44 = vld [vmem:[%s2653_s9 + $0x40] sm:$0xff] }
  0x86   : > { %700 = vmatpush.msra.mxu2 %v2762_v42  ;;  %722 = vmatpush.msra.mxu3 %v2768_v48  ;;  %v4500_v48 = vld [vmem:[#allocation7_spill] sm:$0xff]  ;;  %v4501_v42 = vld [vmem:[#allocation8_spill] sm:$0xff] }
  0x87   : > { %656 = vmatpush.msra.mxu0 %v4496_v49  ;;  %677 = vmatpush.msra.mxu1 %v4497_v26 }
  0x88   : > { %701 = vmatpush.msra.mxu2 %v2780_v20  ;;  %723 = vmatpush.msra.mxu3 %v2785_v46  ;;  %v4503_v46 = vld [vmem:[#allocation12_spill] sm:$0xff] }
  0x89   : > { %702 = vmatmul.f32.vlgmr.msra.gmra.mxu2 %v1794_v36  ;;  %750 = vmatpush.msrb.mxu0 %v4498_v40  ;;  %v4502_v36 = vld [vmem:[#allocation11_spill] sm:$0xff] }
  0x8a   : > { %794 = vmatpush.msrb.mxu2 %v2180_v1  ;;  %678 = vmatpush.msra.mxu1 %v4499_v18  ;;  %v4505_v1 = vld [vmem:[#allocation14_spill] sm:$0xff] }
  0x8b   : > { %724 = vmatpush.msra.mxu3 %v2796_v50  ;;  %751 = vmatpush.msrb.mxu0 %v4500_v48  ;;  %v4504_v50 = vld [vmem:[#allocation15_spill] sm:$0xff] }
  0x8c   : > { %725 = vmatmul.f32.vlgmr.msra.gmra.mxu3 %v2872_v44  ;;  %772 = vmatpush.msrb.mxu1 %v4501_v42 }
  0x8d   : > { %795 = vmatpush.msrb.mxu2 %v2198_v4  ;;  %816 = vmatpush.msrb.mxu3 %v2203_v5  ;;  %v4506_v5 = vld [vmem:[#allocation20_spill] sm:$0xff]  ;;  %v2894_v4 = vld [vmem:[%s2653_s9 + $0x48] sm:$0x1] }
  0x8e   : > { %752 = vmatpush.msrb.mxu0 %v4502_v36  ;;  %773 = vmatpush.msrb.mxu1 %v4503_v46 }
  0x8f   : > { %796 = vmatpush.msrb.mxu2 %v2220_v8  ;;  %817 = vmatpush.msrb.mxu3 %v2227_v9  ;;  %v4507_v8 = vld [vmem:[#allocation18_spill] sm:$0xff] }
  0x90   : > { %679 = vmatmul.f32.vlgmr.msra.gmra.mxu1 %v2773_v34  ;;  %753 = vmatpush.msrb.mxu0 %v4504_v50  ;;  %v4508_v34 = vld [vmem:[#allocation24_spill] sm:$0xff] }
  0x91   : > { %774 = vmatpush.msrb.mxu1 %v4505_v1  ;;  %797 = vmatpush.msrb.mxu2 %v2249_v12  ;;  %v4509_v12 = vld [vmem:[#allocation22_spill] sm:$0xff] }
  0x92   : > { %818 = vmatpush.msrb.mxu3 %v2254_v13  ;;  %657 = vmatmul.f32.vlgmr.msra.gmra.mxu0 %v2872_v44  ;;  %v4511_v13 = vld [vmem:[#allocation26_spill] sm:$0xff] }
  0x93   : > { %705 = vmatmul.f32.gmra.mxu2 %v1795_v47  ;;  %754 = vmatpush.msrb.mxu0 %v4506_v5  ;;  %v4510_v47 = vld [vmem:[#allocation28_spill] sm:$0xff] }
  0x94   : > { %775 = vmatpush.msrb.mxu1 %v4507_v8  ;;  %798 = vmatpush.msrb.mxu2 %v2278_v17  ;;  %v4512_v17 = vld [vmem:[#allocation32_spill] sm:$0xff] }
  0x95   : > { %819 = vmatpush.msrb.mxu3 %v2266_v15  ;;  %755 = vmatpush.msrb.mxu0 %v4508_v34  ;;  %v4513_v15 = vld [vmem:[#allocation30_spill] sm:$0xff] }
  0x96   : > { %728 = vmatmul.f32.gmra.mxu3 %v2894_v4  ;;  %776 = vmatpush.msrb.mxu1 %v4509_v12 }
  0x97   : > { %799 = vmatpush.msrb.mxu2 %v2302_v21  ;;  %820 = vmatpush.msrb.mxu3 %v2290_v19  ;;  %v4514_v21 = vld [vmem:[#allocation36_spill] sm:$0xff]  ;;  %v4515_v19 = vld [vmem:[#allocation34_spill] sm:$0xff] }
  0x98   : > { %756 = vmatpush.msrb.mxu0 %v4510_v47  ;;  %777 = vmatpush.msrb.mxu1 %v4511_v13 }
  0x99   : > { %800 = vmatpush.msrb.mxu2 %v2326_v25  ;;  %821 = vmatpush.msrb.mxu3 %v2314_v23  ;;  %v4516_v25 = vld [vmem:[#allocation39_spill] sm:$0xff]  ;;  %v4517_v23 = vld [vmem:[#allocation38_spill] sm:$0xff] }
  0x9a   : > { %682 = vmatmul.f32.gmra.mxu1 %v1793_v38  ;;  %757 = vmatpush.msrb.mxu0 %v4512_v17  ;;  %v4518_v38 = vld [vmem:[#allocation42_spill] sm:$0xff] }
  0x9b   : > { %778 = vmatpush.msrb.mxu1 %v4513_v15  ;;  %801 = vmatpush.msrb.mxu2 %v2350_v29  ;;  %v4519_v29 = vld [vmem:[#allocation41_spill] sm:$0xff] }
  0x9c   : > { %822 = vmatpush.msrb.mxu3 %v2338_v27  ;;  %758 = vmatpush.msrb.mxu0 %v4514_v21  ;;  %v4520_v27 = vld [vmem:[#allocation45_spill] sm:$0xff] }
  0x9d   : > { %779 = vmatpush.msrb.mxu1 %v4515_v19  ;;  %802 = vmatpush.msrb.mxu2 %v2374_v33  ;;  %v4521_v33 = vld [vmem:[#allocation44_spill] sm:$0xff] }
  0x9e   : > { %823 = vmatpush.msrb.mxu3 %v2362_v31  ;;  %759 = vmatpush.msrb.mxu0 %v4516_v25  ;;  %v4522_v31 = vld [vmem:[#allocation48_spill] sm:$0xff] }
  0x9f   : > { %780 = vmatpush.msrb.mxu1 %v4517_v23  ;;  %803 = vmatpush.msrb.mxu2 %v2398_v37  ;;  %v4523_v37 = vld [vmem:[#allocation46_spill] sm:$0xff] }
  0xa0   : > { %824 = vmatpush.msrb.mxu3 %v2386_v35  ;;  %760 = vmatpush.msrb.mxu0 %v4518_v38 }
  0xa1   : > { %781 = vmatpush.msrb.mxu1 %v4519_v29  ;;  %804 = vmatpush.msrb.mxu2 %v2422_v41  ;;  %v4524_v41 = vld [vmem:[#allocation50_spill] sm:$0xff] }
  0xa2   : > { %825 = vmatpush.msrb.mxu3 %v2410_v39  ;;  %761 = vmatpush.msrb.mxu0 %v4520_v27 }
  0xa3   : > { %782 = vmatpush.msrb.mxu1 %v4521_v33  ;;  %805 = vmatpush.msrb.mxu2 %v2446_v45 }
  0xa4   : > { %826 = vmatpush.msrb.mxu3 %v2434_v43  ;;  %762 = vmatpush.msrb.mxu0 %v4522_v31 }
  0xa5   : > { %783 = vmatpush.msrb.mxu1 %v4523_v37  ;;  %806 = vmatpush.msrb.mxu2 %v4489_v22 }
  0xa6   : > { %827 = vmatpush.msrb.mxu3 %v4490_v24  ;;  %763 = vmatpush.msrb.mxu0 %v2489_v52 }
  0xa7   : > { %784 = vmatpush.msrb.mxu1 %v4524_v41  ;;  %807 = vmatpush.msrb.mxu2 %v4492_v28 }
  0xa8   : > { %828 = vmatpush.msrb.mxu3 %v4493_v53  ;;  %764 = vmatpush.msrb.mxu0 %v2513_v56 }
  0xa9   : > { %785 = vmatpush.msrb.mxu1 %v2501_v54  ;;  %808 = vmatpush.msrb.mxu2 %v4494_v32 }
  0xaa   : > { %829 = vmatpush.msrb.mxu3 %v4495_v30  ;;  %765 = vmatpush.msrb.mxu0 %v2537_v60 }
  0xab   : > { %786 = vmatpush.msrb.mxu1 %v2525_v58  ;;  %809 = vmatpush.msrb.mxu2 %v4496_v49 }
  0xac   : > { %830 = vmatpush.msrb.mxu3 %v4497_v26  ;;  %839 = vmatpush.msra.mxu0 %v2549_v62 }
  0xad   : > { %903 = vmatpush.msra.mxu2 %v4498_v40  ;;  %787 = vmatpush.msrb.mxu1 %v2556_v63  ;;  %v4534_v40 = vld [vmem:[#allocation67_spill] sm:$0xff] }
  0xae   : > { %831 = vmatpush.msrb.mxu3 %v4499_v18  ;;  %840 = vmatpush.msra.mxu0 %v2568_v57 }
  0xaf   : > { %862 = vmatpush.msra.mxu1 %v2573_v59  ;;  %904 = vmatpush.msra.mxu2 %v4500_v48  ;;  %v4541_v48 = vld [vmem:[#allocation73_spill] sm:$0xff] }
  0xb0   : > { %925 = vmatpush.msra.mxu3 %v4501_v42  ;;  %841 = vmatpush.msra.mxu0 %v2582_v61  ;;  %v4536_v42 = vld [vmem:[#allocation69_spill] sm:$0xff] }
  0xb1   : > { %863 = vmatpush.msra.mxu1 %v2587_v51  ;;  %905 = vmatpush.msra.mxu2 %v4502_v36 }
  0xb2   : > { %926 = vmatpush.msra.mxu3 %v4503_v46  ;;  %842 = vmatpush.msra.mxu0 %v2596_v55  ;;  %v4538_v46 = vld [vmem:[#allocation71_spill] sm:$0xff] }
  0xb3   : > { %864 = vmatpush.msra.mxu1 %v2601_v0  ;;  %906 = vmatpush.msra.mxu2 %v4504_v50  ;;  %v4542_v50 = vld [vmem:[#allocation9_spill] sm:$0xff] }
  0xb4   : > { %927 = vmatpush.msra.mxu3 %v4505_v1  ;;  %660 = vmatmul.f32.gmra.mxu0 %v2894_v4  ;;  %v1801_v1 = vld [vmem:[%s2653_s9 + $0x50] sm:$0xff]  ;;  %v4525_v4 = vld [vmem:[#allocation58_spill] sm:$0xff] }
  0xb5   : > { %843 = vmatpush.msra.mxu0 %v2610_v3  ;;  %865 = vmatpush.msra.mxu1 %v2615_v2 }
  0xb6   : > { %907 = vmatpush.msra.mxu2 %v4506_v5  ;;  %928 = vmatpush.msra.mxu3 %v4507_v8  ;;  %v4526_v5 = vld [vmem:[#allocation59_spill] sm:$0xff]  ;;  %v4527_v8 = vld [vmem:[#allocation60_spill] sm:$0xff] }
  0xb7   : > { %844 = vmatpush.msra.mxu0 %v2625_v7  ;;  %866 = vmatpush.msra.mxu1 %v2630_v6 }
  0xb8   : > { %908 = vmatpush.msra.mxu2 %v4508_v34  ;;  %929 = vmatpush.msra.mxu3 %v4509_v12  ;;  %v4528_v12 = vld [vmem:[#allocation61_spill] sm:$0xff] }
  0xb9   : > { %845 = vmatpush.msra.mxu0 %v2639_v10  ;;  %867 = vmatpush.msra.mxu1 %v2644_v11 }
  0xba   : > { %909 = vmatpush.msra.mxu2 %v4510_v47  ;;  %930 = vmatpush.msra.mxu3 %v4511_v13  ;;  %v4529_v13 = vld [vmem:[#allocation62_spill] sm:$0xff]  ;;  %v4558_v47 = vld [vmem:[#allocation43_spill] sm:$0xff] }
  0xbb   : > { %846 = vmatpush.msra.mxu0 %v2660_v14  ;;  %868 = vmatpush.msra.mxu1 %v2665_v16 }
  0xbc   : > { %910 = vmatpush.msra.mxu2 %v4512_v17  ;;  %931 = vmatpush.msra.mxu3 %v4513_v15  ;;  %v4530_v15 = vld [vmem:[#allocation63_spill] sm:$0xff]  ;;  %v1800_v17 = vld [vmem:[%s2653_s9 + $0x48] sm:$0x1] }
  0xbd   : > { %766 = vmatmul.f32.vlgmr.msrb.gmra.mxu0 %v2872_v44  ;;  %869 = vmatpush.msra.mxu1 %v4525_v4 }
  0xbe   : > { %847 = vmatpush.msra.mxu0 %v4526_v5  ;;  %911 = vmatpush.msra.mxu2 %v4514_v21  ;;  %v4531_v21 = vld [vmem:[#allocation64_spill] sm:$0xff] }
  0xbf   : > { %932 = vmatpush.msra.mxu3 %v4515_v19  ;;  %788 = vmatmul.f32.vlgmr.msrb.gmra.mxu1 %v1801_v1  ;;  %v4532_v19 = vld [vmem:[#allocation65_spill] sm:$0xff] }
  0xc0   : > { %848 = vmatpush.msra.mxu0 %v4527_v8  ;;  %870 = vmatpush.msra.mxu1 %v4528_v12 }
  0xc1   : > { %912 = vmatpush.msra.mxu2 %v4516_v25  ;;  %933 = vmatpush.msra.mxu3 %v4517_v23  ;;  %v1802_v25 = vld [vmem:[%s2653_s9 + $0x58] sm:$0x1]  ;;  %v4533_v23 = vld [vmem:[#allocation66_spill] sm:$0xff] }
  0xc2   : > { %849 = vmatpush.msra.mxu0 %v4529_v13  ;;  %871 = vmatpush.msra.mxu1 %v4530_v15 }
  0xc3   : > { %913 = vmatpush.msra.mxu2 %v4518_v38  ;;  %934 = vmatpush.msra.mxu3 %v4519_v29  ;;  %v4535_v29 = vld [vmem:[#allocation68_spill] sm:$0xff]  ;;  %v3071_v38 = vld [vmem:[%s2653_s9 + $0x68] sm:$0x1] }
  0xc4   : > { %850 = vmatpush.msra.mxu0 %v4531_v21  ;;  %872 = vmatpush.msra.mxu1 %v4532_v19 }
  0xc5   : > { %914 = vmatpush.msra.mxu2 %v4520_v27  ;;  %935 = vmatpush.msra.mxu3 %v4521_v33  ;;  %v3006_v27 = vld [vmem:[%s2653_s9 + $0x60] sm:$0xff]  ;;  %v4537_v33 = vld [vmem:[#allocation70_spill] sm:$0xff] }
  0xc6   : > { %769 = vmatmul.f32.gmra.mxu0 %v1800_v17  ;;  %873 = vmatpush.msra.mxu1 %v4533_v23 }
  0xc7   : > { %851 = vmatpush.msra.mxu0 %v4534_v40  ;;  %915 = vmatpush.msra.mxu2 %v4522_v31  ;;  %v4539_v31 = vld [vmem:[#allocation72_spill] sm:$0xff] }
  0xc8   : > { %936 = vmatpush.msra.mxu3 %v4523_v37  ;;  %791 = vmatmul.f32.gmra.mxu1 %v1802_v25  ;;  %v3016_v37 = vpop.f32.mrf.mxu0 }
  0xc9   : > { %832 = vmatmul.f32.vlgmr.msrb.gmra.mxu3 %v2872_v44  ;;  %852 = vmatpush.msra.mxu0 %v4535_v29  ;;  %v4540_v44 = vld [vmem:[#allocation6_spill] sm:$0xff] }
  0xca   : > { %874 = vmatpush.msra.mxu1 %v4536_v42  ;;  %916 = vmatpush.msra.mxu2 %v2489_v52  ;;  %v4543_v52 = vld [vmem:[#allocation10_spill] sm:$0xff] }
  0xcb   : > { %937 = vmatpush.msra.mxu3 %v4524_v41  ;;  %853 = vmatpush.msra.mxu0 %v4537_v33 }
  0xcc   : > { %875 = vmatpush.msra.mxu1 %v4538_v46  ;;  %917 = vmatpush.msra.mxu2 %v2513_v56  ;;  %v1804_v56 = vld [vmem:[%s2653_s9 + $0x68] sm:$0x1] }
  0xcd   : > { %938 = vmatpush.msra.mxu3 %v2501_v54  ;;  %810 = vmatmul.f32.vlgmr.msrb.gmra.mxu2 %v3006_v27  ;;  %v4544_v54 = vld [vmem:[#allocation13_spill] sm:$0xff] }
  0xce   : > { %854 = vmatpush.msra.mxu0 %v2780_v20  ;;  %876 = vmatpush.msra.mxu1 %v4539_v31 }
  0xcf   : > { %918 = vmatpush.msra.mxu2 %v2537_v60  ;;  %939 = vmatpush.msra.mxu3 %v2525_v58  ;;  %v4545_v58 = vld [vmem:[#allocation16_spill] sm:$0xff] }
  0xd0   : > { %855 = vmatmul.f32.vlgmr.msra.gmra.mxu0 %v1801_v1  ;;  %v3021_v41 = vpop.f32.mrf.mxu1  ;;  %877 = vmatpush.msra.mxu1 %v4541_v48 }
  0xd1   : > { %992 = vmatpush.msrb.mxu2 %v2549_v62  ;;  %947 = vmatpush.msrb.mxu0 %v4540_v44  ;;  %v4546_v62 = vld [vmem:[#allocation17_spill] sm:$0xff] }
  0xd2   : > { %940 = vmatpush.msra.mxu3 %v2556_v63  ;;  %878 = vmatmul.f32.vlgmr.msra.gmra.mxu1 %v3006_v27  ;;  %v4554_v63 = vld [vmem:[#allocation31_spill] sm:$0xff]  ;;  %v3223_v44 = vld [vmem:[%s4150_s2 + $0xe0] sm:$0xff] }
  0xd3   : > { %835 = vmatmul.f32.gmra.mxu3 %v1800_v17  ;;  %948 = vmatpush.msrb.mxu0 %v4542_v50  ;;  %v3147_v17 = vld [vmem:[%s4150_s2 + $0x170] sm:$0xff]  ;;  %4570 = vst [vmem:[#allocation8_spill] sm:$0xff] %v3223_v44  ;;  %v3235_v50 = vld [vmem:[%s4151_s3 + $0x60] sm:$0xff] }
  0xd4   : > { %969 = vmatpush.msrb.mxu1 %v4543_v52  ;;  %993 = vmatpush.msrb.mxu2 %v2568_v57  ;;  %4562 = vst [vmem:[#allocation51_spill] sm:$0xff] %v3147_v17  ;;  %v3241_v52 = vld [vmem:[%s4150_s2 + $0x50] sm:$0xff] }
  0xd5   : > { %1015 = vmatpush.msrb.mxu3 %v2573_v59  ;;  %949 = vmatpush.msrb.mxu0 %v4544_v54  ;;  %v4547_v59 = vld [vmem:[#allocation19_spill] sm:$0xff]  ;;  %4572 = vst [vmem:[#allocation12_spill] sm:$0xff] %v3235_v50  ;;  %v3248_v54 = vld [vmem:[%s4150_s2 + $0xd8] sm:$0xff] }
  0xd6   : > { %970 = vmatpush.msrb.mxu1 %v2227_v9  ;;  %994 = vmatpush.msrb.mxu2 %v2582_v61  ;;  %v4548_v9 = vld [vmem:[#allocation21_spill] sm:$0xff]  ;;  %v4550_v61 = vld [vmem:[#allocation23_spill] sm:$0xff]  ;;  %4573 = vst [vmem:[#allocation15_spill] sm:$0xff] %v3241_v52 }
  0xd7   : > { %1016 = vmatpush.msrb.mxu3 %v2587_v51  ;;  %950 = vmatpush.msrb.mxu0 %v4545_v58  ;;  %v4549_v51 = vld [vmem:[#allocation25_spill] sm:$0xff]  ;;  %4574 = vst [vmem:[#allocation14_spill] sm:$0xff] %v3248_v54  ;;  %v3260_v58 = vld [vmem:[%s4151_s3 + $0x58] sm:$0xff] }
  0xd8   : > { %971 = vmatpush.msrb.mxu1 %v4546_v62  ;;  %995 = vmatpush.msrb.mxu2 %v2596_v55  ;;  %v482_v57 = vpop.f32.mrf.mxu1  ;;  %v4552_v55 = vld [vmem:[#allocation27_spill] sm:$0xff]  ;;  %4576 = vst [vmem:[#allocation18_spill] sm:$0xff] %v3260_v58  ;;  %v3266_v62 = vld [vmem:[%s4150_s2 + $0x48] sm:$0xff] }
  0xd9   : > { %1017 = vmatpush.msrb.mxu3 %v2601_v0  ;;  %813 = vmatmul.f32.gmra.mxu2 %v1804_v56  ;;  %v4551_v0 = vld [vmem:[#allocation29_spill] sm:$0xff]  ;;  %4577 = vst [vmem:[#allocation24_spill] sm:$0xff] %v3266_v62  ;;  %v3272_v57 = vld [vmem:[%s4150_s2 + $0xd0] sm:$0xff] }
  0xda   : > { %v460_v60 = vpop.f32.mrf.mxu0  ;;  %858 = vmatmul.f32.gmra.mxu0 %v1802_v25  ;;  %972 = vmatpush.msrb.mxu1 %v4547_v59  ;;  %v3165_v25 = vld [vmem:[%s4150_s2 + $0xf0] sm:$0xff]  ;;  %4578 = vst [vmem:[#allocation22_spill] sm:$0xff] %v3272_v57  ;;  %v3278_v59 = vld [vmem:[%s4150_s2 + $0x148] sm:$0xff] }
  0xdb   : > { %951 = vmatpush.msrb.mxu0 %v4548_v9  ;;  %996 = vmatpush.msrb.mxu2 %v2610_v3  ;;  %v523_v3 = vpop.f32.mrf.mxu3  ;;  %4579 = vst [vmem:[#allocation28_spill] sm:$0xff] %v3278_v59  ;;  %v3284_v9 = vld [vmem:[%s4151_s3 + $0x50] sm:$0xff] }
  0xdc   : > { %1018 = vmatpush.msrb.mxu3 %v2615_v2  ;;  %881 = vmatmul.f32.gmra.mxu1 %v1804_v56  ;;  %v4553_v2 = vld [vmem:[#allocation33_spill] sm:$0xff]  ;;  %v3254_v56 = vld [vmem:[%s4150_s2 + $0x150] sm:$0xff]  ;;  %4580 = vst [vmem:[#allocation26_spill] sm:$0xff] %v3284_v9 }
  0xdd   : > { %952 = vmatpush.msrb.mxu0 %v4549_v51  ;;  %973 = vmatpush.msrb.mxu1 %v4550_v61  ;;  %4575 = vst [vmem:[#allocation20_spill] sm:$0xff] %v3254_v56  ;;  %v3291_v51 = vld [vmem:[%s4150_s2 + $0x40] sm:$0xff] }
  0xde   : > { %997 = vmatpush.msrb.mxu2 %v2625_v7  ;;  %1019 = vmatpush.msrb.mxu3 %v2630_v6  ;;  %v4555_v6 = vld [vmem:[#allocation37_spill] sm:$0xff]  ;;  %v1808_v7 = vld [vmem:[%s2653_s9 + $0x70] sm:$0xff]  ;;  %4581 = vst [vmem:[#allocation32_spill] sm:$0xff] %v3291_v51 }
  0xdf   : > { %953 = vmatpush.msrb.mxu0 %v4551_v0  ;;  %974 = vmatpush.msrb.mxu1 %v4552_v55  ;;  %v3297_v0 = vld [vmem:[%s4150_s2 + $0xc8] sm:$0xff]  ;;  %v3303_v55 = vld [vmem:[%s4150_s2 + $0x140] sm:$0xff] }
  0xe0   : > { %998 = vmatpush.msrb.mxu2 %v2639_v10  ;;  %1020 = vmatpush.msrb.mxu3 %v2644_v11  ;;  %v4556_v10 = vld [vmem:[#allocation35_spill] sm:$0xff]  ;;  %v4557_v11 = vld [vmem:[#allocation40_spill] sm:$0xff]  ;;  %4582 = vst [vmem:[#allocation30_spill] sm:$0xff] %v3297_v0 }
  0xe1   : > { %954 = vmatpush.msrb.mxu0 %v4553_v2  ;;  %975 = vmatpush.msrb.mxu1 %v4554_v63  ;;  %4583 = vst [vmem:[#allocation36_spill] sm:$0xff] %v3303_v55  ;;  %v3315_v2 = vld [vmem:[%s4150_s2 + $0x38] sm:$0xff]  ;;  %v3321_v63 = vld [vmem:[%s4150_s2 + $0xc0] sm:$0xff] }
  0xe2   : > { %v546_v36 = vpop.f32.mrf.mxu0  ;;  %999 = vmatpush.msrb.mxu2 %v2660_v14  ;;  %1021 = vmatpush.msrb.mxu3 %v2665_v16  ;;  %v501_v16 = vpop.f32.mrf.mxu2  ;;  %4585 = vst [vmem:[#allocation39_spill] sm:$0xff] %v3315_v2 }
  0xe3   : > { %919 = vmatmul.f32.vlgmr.msra.gmra.mxu2 %v3006_v27  ;;  %955 = vmatpush.msrb.mxu0 %v4555_v6  ;;  %v547_v14 = vadd.f32 %v546_v36, %v523_v3  ;;  %v526_v1 = vpop.f32.mrf.mxu3  ;;  %v3309_v3 = vld [vmem:[%s4151_s3 + $0x48] sm:$0xff]  ;;  %4586 = vst [vmem:[#allocation38_spill] sm:$0xff] %v3321_v63  ;;  %v3327_v36 = vld [vmem:[%s4150_s2 + $0x138] sm:$0xff]  ;;  %v3333_v6 = vld [vmem:[%s4151_s3 + $0x40] sm:$0xff] }
  0xe4   : > { %v569_v34 = vpop.f32.mrf.mxu1  ;;  %976 = vmatpush.msrb.mxu1 %v4556_v10  ;;  %1000 = vmatpush.msrb.mxu2 %v4526_v5  ;;  %4584 = vst [vmem:[#allocation34_spill] sm:$0xff] %v3309_v3  ;;  %v3351_v10 = vld [vmem:[%s4150_s2 + $0x130] sm:$0xff] }
  0xe5   : > { %1022 = vmatpush.msrb.mxu3 %v4525_v4  ;;  %956 = vmatpush.msrb.mxu0 %v4557_v11  ;;  %4587 = vst [vmem:[#allocation42_spill] sm:$0xff] %v3327_v36  ;;  %v3357_v11 = vld [vmem:[%s4151_s3 + $0x38] sm:$0xff] }
  0xe6   : > { %941 = vmatmul.f32.vlgmr.msra.gmra.mxu3 %v1808_v7  ;;  %977 = vmatpush.msrb.mxu1 %v2386_v35  ;;  %v570_v35 = vadd.f32 %v569_v34, %v547_v14  ;;  %4588 = vst [vmem:[#allocation41_spill] sm:$0xff] %v3333_v6  ;;  %v3345_v34 = vld [vmem:[%s4150_s2 + $0xb8] sm:$0xff]  ;;  %v3363_v14 = vld [vmem:[%s4150_s2 + $0x28] sm:$0xff] }
  0xe7   : > { %1001 = vmatpush.msrb.mxu2 %v4527_v8  ;;  %1023 = vmatpush.msrb.mxu3 %v4528_v12  ;;  %4590 = vst [vmem:[#allocation44_spill] sm:$0xff] %v3345_v34 }
  0xe8   : > { %957 = vmatpush.msrb.mxu0 %v4558_v47  ;;  %978 = vmatpush.msrb.mxu1 %v2410_v39  ;;  %v3080_v39 = vld [vmem:[%s2653_s9 + $0x78] sm:$0x1]  ;;  %v578_v8 = vrot.slane %v570_v35, 1  ;;  %4591 = vst [vmem:[#allocation48_spill] sm:$0xff] %v3351_v10  ;;  %v3369_v47 = vld [vmem:[%s4150_s2 + $0xb0] sm:$0xff] }
  0xe9   : > { %1002 = vmatpush.msrb.mxu2 %v4529_v13  ;;  %1024 = vmatpush.msrb.mxu3 %v4530_v15  ;;  %v3100_v13 = vld [vmem:[%s4152_s4] ss:$0 sm:$0xff]  ;;  %4592 = vst [vmem:[#allocation46_spill] sm:$0xff] %v3357_v11 }
  0xea   : > { %958 = vmatpush.msrb.mxu0 %v2446_v45  ;;  %979 = vmatpush.msrb.mxu1 %v2434_v43  ;;  %v480_v45 = vadd.f32 %v3021_v41, %v3016_v37  ;;  %v3116_v15 = vld [vmem:[%s2653_s9 + $0x80] sm:$0xff]  ;;  %v3214_v37 = vld [vmem:[%s4150_s2 + $0x58] sm:$0xff]  ;;  %v3218_v41 = vld [vmem:[%s2653_s9 + $0x88] sm:$0x1]  ;;  %4593 = vst [vmem:[#allocation50_spill] sm:$0xff] %v3363_v14 }
  0xeb   : > { %1003 = vmatpush.msrb.mxu2 %v4531_v21  ;;  %1025 = vmatpush.msrb.mxu3 %v4532_v19  ;;  %v549_v4 = vpop.f32.mrf.mxu0  ;;  %v3153_v21 = vld [vmem:[%s4151_s3 + $0x78] sm:$0xff]  ;;  %v3159_v19 = vld [vmem:[%s4150_s2 + $0x68] sm:$0xff]  ;;  %4569 = vst [vmem:[#allocation7_spill] sm:$0xff] %v3214_v37 }
  0xec   : > { %922 = vmatmul.f32.gmra.mxu2 %v3071_v38  ;;  %959 = vmatpush.msrb.mxu0 %v4489_v22  ;;  %v550_v5 = vadd.f32 %v549_v4, %v526_v1  ;;  %4563 = vst [vmem:[#allocation54_spill] sm:$0xff] %v3153_v21  ;;  %v3381_v1 = vld [vmem:[%s4151_s3 + $0x30] sm:$0xff]  ;;  %v3387_v4 = vld [vmem:[%s4150_s2 + $0x20] sm:$0xff] }
  0xed   : > { %980 = vmatpush.msrb.mxu1 %v4490_v24  ;;  %1004 = vmatpush.msrb.mxu2 %v4534_v40  ;;  %v572_v43 = vpop.f32.mrf.mxu1  ;;  %v3173_v40 = vld [vmem:[%s4150_s2 + $0x168] sm:$0xff]  ;;  %4594 = vst [vmem:[#allocation58_spill] sm:$0xff] %v3369_v47 }
  0xee   : > { %1026 = vmatpush.msrb.mxu3 %v4533_v23  ;;  %960 = vmatpush.msrb.mxu0 %v4492_v28  ;;  %v573_v12 = vadd.f32 %v572_v43, %v550_v5  ;;  %v502_v28 = vadd.f32 %v501_v16, %v480_v45  ;;  %4564 = vst [vmem:[#allocation53_spill] sm:$0xff] %v3173_v40  ;;  %v3399_v5 = vld [vmem:[%s4150_s2 + $0x120] sm:$0xff]  ;;  %v3405_v43 = vld [vmem:[%s4151_s3 + $0x28] sm:$0xff] }
  0xef   : > { %944 = vmatmul.f32.gmra.mxu3 %v3080_v39  ;;  %981 = vmatpush.msrb.mxu1 %v4493_v53  ;;  %4596 = vst [vmem:[#allocation60_spill] sm:$0xff] %v3381_v1 }
  0xf0   : > { %1005 = vmatpush.msrb.mxu2 %v4535_v29  ;;  %1027 = vmatpush.msrb.mxu3 %v4536_v42  ;;  %v579_v24 = vrot.slane %v573_v12, 1  ;;  %v504_v22 = vpop.f32.mrf.mxu2  ;;  %v3179_v29 = vld [vmem:[%s4151_s3 + $0x70] sm:$0xff]  ;;  %v3186_v42 = vld [vmem:[%s4150_s2 + $0x60] sm:$0xff]  ;;  %4597 = vst [vmem:[#allocation61_spill] sm:$0xff] %v3387_v4 }
  0xf1   : > { %961 = vmatpush.msrb.mxu0 %v4494_v32  ;;  %982 = vmatpush.msrb.mxu1 %v4495_v30  ;;  %v3112_v32 = vld [vmem:[%s4150_s2 + $0x78] sm:$0xff]  ;;  %4565 = vst [vmem:[#allocation56_spill] sm:$0xff] %v3179_v29  ;;  %v3417_v12 = vld [vmem:[%s4150_s2 + $0xa0] sm:$0xff] }
  0xf2   : > { %1006 = vmatpush.msrb.mxu2 %v4537_v33  ;;  %1028 = vmatpush.msrb.mxu3 %v4538_v46  ;;  %v580_v53 = vsel %vm577_vm0, %v578_v8, %v579_v24  ;;  %4559 = vst [vmem:[#allocation49_spill] sm:$0xff] %v3112_v32  ;;  %v3192_v33 = vld [vmem:[%s4150_s2 + $0xe8] sm:$0xff]  ;;  %v3198_v46 = vld [vmem:[%s4150_s2 + $0x160] sm:$0xff]  ;;  %v3411_v8 = vld [vmem:[%s4150_s2 + $0x18] sm:$0xff] }
  0xf3   : > { %962 = vmatpush.msrb.mxu0 %v4496_v49  ;;  %983 = vmatpush.msrb.mxu1 %v4497_v26  ;;  %v582_v30 = vadd.f32 %v580_v53, %v502_v28  ;;  %v3122_v26 = vld [vmem:[%s4150_s2 + $0x178] sm:$0xff]  ;;  %4566 = vst [vmem:[#allocation55_spill] sm:$0xff] %v3192_v33  ;;  %v3429_v22 = vld [vmem:[%s4151_s3 + $0x20] sm:$0xff]  ;;  %v3435_v28 = vld [vmem:[%s4150_s2 + $0x10] sm:$0xff] }
  0xf4   : > { %1007 = vmatpush.msrb.mxu2 %v2780_v20  ;;  %1029 = vmatpush.msrb.mxu3 %v4539_v31  ;;  %v3130_v20 = vld [vmem:[%s4150_s2 + $0x70] sm:$0xff]  ;;  %4567 = vst [vmem:[#allocation5_spill] sm:$0xff] %v3198_v46  ;;  %v3206_v31 = vld [vmem:[%s4151_s3 + $0x68] sm:$0xff]  ;;  %v3423_v24 = vld [vmem:[%s4150_s2 + $0x118] sm:$0xff] }
  0xf5   : > { %1008 = vmatmul.f32.vlgmr.msrb.gmra.mxu2 %v1808_v7  ;;  %1056 = vmatpush.msra.mxu0 %v3112_v32  ;;  %v586_v49 = vadd.f32 %v3100_v13, %v582_v30  ;;  %4560 = vst [vmem:[#allocation47_spill] sm:$0xff] %v3130_v20  ;;  %v3339_v7 = vld [vmem:[%s4150_s2 + $0x30] sm:$0xff]  ;;  %v3441_v30 = vld [vmem:[%s4150_s2 + $0x98] sm:$0xff] }
  0xf6   : > { %1100 = vmatpush.msra.mxu2 %v3122_v26  ;;  %984 = vmatpush.msrb.mxu1 %v4499_v18  ;;  %v3141_v18 = vld [vmem:[%s4150_s2 + $0xf8] sm:$0xff]  ;;  %4568 = vst [vmem:[#allocation57_spill] sm:$0xff] %v3206_v31 }
  0xf7   : > { %1030 = vmatpush.msrb.mxu3 %v4541_v48  ;;  %1057 = vmatpush.msra.mxu0 %v3130_v20  ;;  %588 = vst.msk [vmem:[%s3133_s10] sm:$0xff] %vm587_vm1, %v586_v49  ;;  %v3229_v48 = vld [vmem:[%s4150_s2 + $0x158] sm:$0xff]  ;;  %v3447_v49 = vld [vmem:[%s4150_s2 + $0x110] sm:$0xff] }
  0xf8   : > { %1031 = vmatmul.f32.vlgmr.msrb.gmra.mxu3 %v3116_v15  ;;  %4561 = vst [vmem:[#allocation52_spill] sm:$0xff] %v3141_v18  ;;  %1078 = vmatpush.msra.mxu1 %v3141_v18 }
  0xf9   : > { %1101 = vmatpush.msra.mxu2 %v3147_v17  ;;  %1122 = vmatpush.msra.mxu3 %v3153_v21  ;;  %4571 = vst [vmem:[#allocation11_spill] sm:$0xff] %v3229_v48 }
  0xfa   : > { %1058 = vmatpush.msra.mxu0 %v3159_v19  ;;  %1079 = vmatpush.msra.mxu1 %v3165_v25  ;;  %v3168_v23 = vpop.f32.mrf.mxu2  ;;  %4589 = vst [vmem:[#allocation45_spill] sm:$0xff] %v3339_v7 }
  0xfb   : > { %1102 = vmatpush.msra.mxu2 %v3173_v40  ;;  %1123 = vmatpush.msra.mxu3 %v3179_v29  ;;  %4599 = vst [vmem:[#allocation63_spill] sm:$0xff] %v3399_v5 }
  0xfc   : > { %985 = vmatmul.f32.vlgmr.msrb.gmra.mxu1 %v3006_v27  ;;  %1059 = vmatpush.msra.mxu0 %v3186_v42  ;;  %4600 = vst [vmem:[#allocation64_spill] sm:$0xff] %v3405_v43 }
  0xfd   : > { %1080 = vmatpush.msra.mxu1 %v3192_v33  ;;  %1103 = vmatpush.msra.mxu2 %v3198_v46  ;;  %v3201_v27 = vpop.f32.mrf.mxu3  ;;  %4601 = vst [vmem:[#allocation65_spill] sm:$0xff] %v3411_v8 }
  0xfe   : > { %1124 = vmatpush.msra.mxu3 %v3206_v31  ;;  %963 = vmatmul.f32.vlgmr.msrb.gmra.mxu0 %v3116_v15  ;;  %4602 = vst [vmem:[#allocation66_spill] sm:$0xff] %v3417_v12 }
  0xff   : > { %1011 = vmatmul.f32.gmra.mxu2 %v3080_v39  ;;  %1060 = vmatpush.msra.mxu0 %v3214_v37  ;;  %v3393_v39 = vld [vmem:[%s4150_s2 + $0xa8] sm:$0xff]  ;;  %4603 = vst [vmem:[#allocation67_spill] sm:$0xff] %v3423_v24 }
 0x100   : > { %1081 = vmatpush.msra.mxu1 %v3223_v44  ;;  %1104 = vmatpush.msra.mxu2 %v3229_v48  ;;  %4598 = vst [vmem:[#allocation62_spill] sm:$0xff] %v3393_v39 }
 0x101   : > { %1125 = vmatpush.msra.mxu3 %v3235_v50  ;;  %1061 = vmatpush.msra.mxu0 %v3241_v52  ;;  %4604 = vst [vmem:[#allocation68_spill] sm:$0xff] %v3429_v22 }
 0x102   : > { %1034 = vmatmul.f32.gmra.mxu3 %v3218_v41  ;;  %1082 = vmatpush.msra.mxu1 %v3248_v54  ;;  %4605 = vst [vmem:[#allocation69_spill] sm:$0xff] %v3435_v28 }
 0x103   : > { %1105 = vmatpush.msra.mxu2 %v3254_v56  ;;  %1126 = vmatpush.msra.mxu3 %v3260_v58  ;;  %v617_v60 = vpop.f32.mrf.mxu2  ;;  %4606 = vst [vmem:[#allocation70_spill] sm:$0xff] %v3441_v30 }
 0x104   : > { %1062 = vmatpush.msra.mxu0 %v3266_v62  ;;  %1083 = vmatpush.msra.mxu1 %v3272_v57  ;;  %4607 = vst [vmem:[#allocation71_spill] sm:$0xff] %v3447_v49  ;;  %v3453_v60 = vld [vmem:[%s4151_s3 + $0x18] sm:$0xff] }
 0x105   : > { %1106 = vmatpush.msra.mxu2 %v3278_v59  ;;  %1127 = vmatpush.msra.mxu3 %v3284_v9  ;;  %4608 = vst [vmem:[#allocation72_spill] sm:$0xff] %v3453_v60 }
 0x106   : > { %988 = vmatmul.f32.gmra.mxu1 %v3071_v38  ;;  %1063 = vmatpush.msra.mxu0 %v3291_v51  ;;  %v639_v61 = vpop.f32.mrf.mxu3  ;;  %v3375_v38 = vld [vmem:[%s4150_s2 + $0x128] sm:$0xff] }
 0x107   : > { %1084 = vmatpush.msra.mxu1 %v3297_v0  ;;  %1107 = vmatpush.msra.mxu2 %v3303_v55  ;;  %4595 = vst [vmem:[#allocation59_spill] sm:$0xff] %v3375_v38  ;;  %v3459_v61 = vld [vmem:[%s4150_s2 + $0x8] sm:$0xff] }
 0x108   : > { %1128 = vmatpush.msra.mxu3 %v3309_v3  ;;  %1064 = vmatpush.msra.mxu0 %v3315_v2  ;;  %4609 = vst [vmem:[#allocation6_spill] sm:$0xff] %v3459_v61 }
 0x109   : > { %1085 = vmatpush.msra.mxu1 %v3321_v63  ;;  %1108 = vmatpush.msra.mxu2 %v3327_v36 }
 0x10a   : > { %1129 = vmatpush.msra.mxu3 %v3333_v6  ;;  %1065 = vmatpush.msra.mxu0 %v3339_v7 }
 0x10b   : > { %1086 = vmatpush.msra.mxu1 %v3345_v34  ;;  %1109 = vmatpush.msra.mxu2 %v3351_v10 }
 0x10c   : > { %1130 = vmatpush.msra.mxu3 %v3357_v11  ;;  %1066 = vmatpush.msra.mxu0 %v3363_v14  ;;  %v703_v16 = vpop.f32.mrf.mxu2 }
 0x10d   : > { %1087 = vmatpush.msra.mxu1 %v3369_v47  ;;  %1110 = vmatpush.msra.mxu2 %v3375_v38  ;;  %v680_v35 = vpop.f32.mrf.mxu1  ;;  %v3522_v38 = vld [vmem:[%s4151_s3] sm:$0xff] }
 0x10e   : > { %1131 = vmatpush.msra.mxu3 %v3381_v1  ;;  %1067 = vmatpush.msra.mxu0 %v3387_v4  ;;  %v704_v53 = vadd.f32 %v703_v16, %v680_v35  ;;  %v3465_v16 = vld [vmem:[%s4150_s2 + $0x90] sm:$0xff]  ;;  %v3471_v35 = vld [vmem:[%s4150_s2 + $0x108] sm:$0xff]  ;;  %v637_v1 = vadd.f32 %v3201_v27, %v3168_v23  ;;  %4615 = vst [vmem:[#allocation17_spill] sm:$0xff] %v3522_v38 }
 0x10f   : > { %1088 = vmatpush.msra.mxu1 %v3393_v39  ;;  %1111 = vmatpush.msra.mxu2 %v3399_v5  ;;  %v726_v45 = vpop.f32.mrf.mxu3  ;;  %4610 = vst [vmem:[#allocation73_spill] sm:$0xff] %v3465_v16  ;;  %v3528_v23 = vld [vmem:[%s4151_s3 + $0xf0] sm:$0xff]  ;;  %v658_v27 = vpop.f32.mrf.mxu0 }
 0x110   : > { %1132 = vmatpush.msra.mxu3 %v3405_v43  ;;  %1068 = vmatpush.msra.mxu0 %v3411_v8  ;;  %4611 = vst [vmem:[#allocation9_spill] sm:$0xff] %v3471_v35 }
 0x111   : > { %1089 = vmatpush.msra.mxu1 %v3417_v12  ;;  %1112 = vmatpush.msra.mxu2 %v3423_v24 }
 0x112   : > { %1133 = vmatpush.msra.mxu3 %v3429_v22  ;;  %1069 = vmatpush.msra.mxu0 %v3435_v28  ;;  %v727_v22 = vadd.f32 %v726_v45, %v704_v53  ;;  %v3501_v45 = vld [vmem:[%s4151_s3 + $0x8] sm:$0xff]  ;;  %v3507_v53 = vld [vmem:[%s4151_s3 + $0xf8] sm:$0xff] }
 0x113   : > { %1090 = vmatpush.msra.mxu1 %v3441_v30  ;;  %1113 = vmatpush.msra.mxu2 %v3447_v49  ;;  %v3483_v49 = vld [vmem:[%s4150_s2] sm:$0xff]  ;;  %4614 = vst [vmem:[#allocation16_spill] sm:$0xff] %v3501_v45 }
 0x114   : > { %1134 = vmatpush.msra.mxu3 %v3453_v60  ;;  %1070 = vmatpush.msra.mxu0 %v3459_v61  ;;  %v3477_v60 = vld [vmem:[%s4151_s3 + $0x10] sm:$0xff] }
 0x115   : > { %1091 = vmatpush.msra.mxu1 %v3465_v16  ;;  %1114 = vmatpush.msra.mxu2 %v3471_v35  ;;  %4612 = vst [vmem:[#allocation10_spill] sm:$0xff] %v3477_v60  ;;  %v3489_v35 = vld [vmem:[%s4150_s2 + $0x88] sm:$0xff] }
 0x116   : > { %1135 = vmatpush.msra.mxu3 %v3477_v60  ;;  %1071 = vmatpush.msra.mxu0 %v3483_v49  ;;  %v706_v24 = vpop.f32.mrf.mxu2  ;;  %v3495_v60 = vld [vmem:[%s4150_s2 + $0x100] sm:$0xff] }
 0x117   : > { %1092 = vmatpush.msra.mxu1 %v3489_v35  ;;  %4613 = vst [vmem:[#allocation13_spill] sm:$0xff] %v3495_v60  ;;  %1115 = vmatpush.msra.mxu2 %v3495_v60  ;;  %v683_v43 = vpop.f32.mrf.mxu1  ;;  %v3516_v60 = vld [vmem:[%s4150_s2 + $0x80] sm:$0xff] }
 0x118   : > { %1136 = vmatpush.msra.mxu3 %v3501_v45  ;;  %1145 = vmatpush.msrb.mxu0 %v3507_v53  ;;  %v707_v5 = vadd.f32 %v706_v24, %v683_v43  ;;  %v734_v43 = vrot.slane %v727_v22, 1 }
 0x119   : > { %1209 = vmatpush.msrb.mxu2 %v3112_v32  ;;  %1093 = vmatpush.msra.mxu1 %v3516_v60  ;;  %v729_v45 = vpop.f32.mrf.mxu3  ;;  %v3534_v32 = vld [vmem:[%s4151_s3 + $0x178] sm:$0xff] }
 0x11a   : > { %1137 = vmatpush.msra.mxu3 %v3522_v38  ;;  %1146 = vmatpush.msrb.mxu0 %v3528_v23  ;;  %v730_v24 = vadd.f32 %v729_v45, %v707_v5  ;;  %4616 = vst [vmem:[#allocation19_spill] sm:$0xff] %v3534_v32  ;;  %v3542_v38 = vld [vmem:[%s4151_s3 + $0xe8] sm:$0xff]  ;;  %v3548_v5 = vld [vmem:[%s4151_s3 + $0x170] sm:$0xff]  ;;  %v659_v45 = vadd.f32 %v658_v27, %v637_v1  ;;  %v3572_v27 = vld [vmem:[%s4151_s3 + $0xd8] sm:$0xff] }
 0x11b   : > { %1168 = vmatpush.msrb.mxu1 %v3534_v32  ;;  %1210 = vmatpush.msrb.mxu2 %v3130_v20  ;;  %v3563_v20 = vld [vmem:[%s4151_s3 + $0x168] sm:$0xff]  ;;  %4617 = vst [vmem:[#allocation21_spill] sm:$0xff] %v3572_v27 }
 0x11c   : > { %1231 = vmatpush.msrb.mxu3 %v3141_v18  ;;  %1147 = vmatpush.msrb.mxu0 %v3542_v38  ;;  %v735_v22 = vrot.slane %v730_v24, 1  ;;  %v3556_v18 = vld [vmem:[%s4151_s3 + $0xe0] sm:$0xff] }
 0x11d   : > { %1169 = vmatpush.msrb.mxu1 %v3548_v5  ;;  %1211 = vmatpush.msrb.mxu2 %v3159_v19 }
 0x11e   : > { %1232 = vmatpush.msrb.mxu3 %v3165_v25  ;;  %1148 = vmatpush.msrb.mxu0 %v3556_v18  ;;  %v736_v24 = vsel %vm577_vm0, %v734_v43, %v735_v22  ;;  %v3578_v43 = vld [vmem:[%s4151_s3 + $0x160] sm:$0xff] }
 0x11f   : > { %1170 = vmatpush.msrb.mxu1 %v3563_v20  ;;  %1212 = vmatpush.msrb.mxu2 %v3186_v42  ;;  %v738_v1 = vadd.f32 %v736_v24, %v659_v45  ;;  %4618 = vst [vmem:[#allocation25_spill] sm:$0xff] %v3578_v43  ;;  %v3593_v45 = vld [vmem:[%s4151_s3 + $0x158] sm:$0xff]  ;;  %v3603_v24 = vld [vmem:[%s4151_s3 + $0xc8] sm:$0xff] }
 0x120   : > { %1233 = vmatpush.msrb.mxu3 %v3192_v33  ;;  %966 = vmatmul.f32.gmra.mxu0 %v3218_v41  ;;  %v3587_v41 = vld [vmem:[%s4151_s3 + $0xd0] sm:$0xff]  ;;  %4620 = vst [vmem:[#allocation29_spill] sm:$0xff] %v3593_v45  ;;  %v3697_v33 = vld [vmem:[%s4151_s3 + $0x98] sm:$0xff] }
 0x121   : > { %1149 = vmatpush.msrb.mxu0 %v3572_v27  ;;  %1171 = vmatpush.msrb.mxu1 %v3578_v43  ;;  %v739_v22 = vadd.f32 %v3100_v13, %v738_v1  ;;  %4619 = vst [vmem:[#allocation23_spill] sm:$0xff] %v3587_v41  ;;  %v3609_v1 = vld [vmem:[%s4151_s3 + $0x150] sm:$0xff] }
 0x122   : > { %1213 = vmatpush.msrb.mxu2 %v3214_v37  ;;  %1234 = vmatpush.msrb.mxu3 %v3223_v44  ;;  %4621 = vst [vmem:[#allocation27_spill] sm:$0xff] %v3603_v24  ;;  %v3682_v44 = vld [vmem:[%s4151_s3 + $0x128] sm:$0xff]  ;;  %v3691_v37 = vld [vmem:[%s4151_s3 + $0x120] sm:$0xff] }
 0x123   : > { %1150 = vmatpush.msrb.mxu0 %v3587_v41  ;;  %1172 = vmatpush.msrb.mxu1 %v3593_v45  ;;  %1798 = vst.msk [vmem:[%s3133_s10 + $0x8] sm:$0xff] %vm587_vm1, %v739_v22  ;;  %v3617_v22 = vld [vmem:[%s4151_s3 + $0xc0] sm:$0xff] }
 0x124   : > { %1214 = vmatpush.msrb.mxu2 %v3241_v52  ;;  %1235 = vmatpush.msrb.mxu3 %v3248_v54  ;;  %4622 = vst [vmem:[#allocation33_spill] sm:$0xff] %v3609_v1  ;;  %v3623_v54 = vld [vmem:[%s4151_s3 + $0x148] sm:$0xff]  ;;  %v3639_v52 = vld [vmem:[%s4151_s3 + $0xb8] sm:$0xff] }
 0x125   : > { %1151 = vmatpush.msrb.mxu0 %v3603_v24  ;;  %1173 = vmatpush.msrb.mxu1 %v3609_v1  ;;  %4623 = vst [vmem:[#allocation31_spill] sm:$0xff] %v3617_v22 }
 0x126   : > { %1215 = vmatpush.msrb.mxu2 %v3266_v62  ;;  %1236 = vmatpush.msrb.mxu3 %v3272_v57  ;;  %4624 = vst [vmem:[#allocation37_spill] sm:$0xff] %v3623_v54  ;;  %v1815_v62 = vld [vmem:[%s2653_s9 + $0x90] sm:$0xff]  ;;  %v3633_v57 = vld [vmem:[%s4151_s3 + $0x140] sm:$0xff] }
 0x127   : > { %1152 = vmatpush.msrb.mxu0 %v3617_v22  ;;  %1174 = vmatpush.msrb.mxu1 %v3623_v54  ;;  %4625 = vst [vmem:[#allocation35_spill] sm:$0xff] %v3633_v57 }
 0x128   : > { %1216 = vmatpush.msrb.mxu2 %v3291_v51  ;;  %1237 = vmatpush.msrb.mxu3 %v3297_v0  ;;  %4626 = vst [vmem:[#allocation40_spill] sm:$0xff] %v3639_v52  ;;  %v3647_v0 = vld [vmem:[%s4151_s3 + $0xb0] sm:$0xff]  ;;  %v3653_v51 = vld [vmem:[%s4151_s3 + $0x138] sm:$0xff] }
 0x129   : > { %1072 = vmatmul.f32.vlgmr.msra.gmra.mxu0 %v3116_v15  ;;  %1175 = vmatpush.msrb.mxu1 %v3633_v57  ;;  %4627 = vst [vmem:[#allocation43_spill] sm:$0xff] %v3647_v0 }
 0x12a   : > { %1153 = vmatpush.msrb.mxu0 %v3639_v52  ;;  %1217 = vmatpush.msrb.mxu2 %v3315_v2  ;;  %4628 = vst [vmem:[#allocation74_spill] sm:$0xff] %v3653_v51  ;;  %v3667_v2 = vld [vmem:[%s4151_s3 + $0x130] sm:$0xff] }
 0x12b   : > { %1238 = vmatpush.msrb.mxu3 %v3321_v63  ;;  %1094 = vmatmul.f32.vlgmr.msra.gmra.mxu1 %v1815_v62  ;;  %v3661_v63 = vld [vmem:[%s4151_s3 + $0xa8] sm:$0xff]  ;;  %4630 = vst [vmem:[#allocation76_spill] sm:$0xff] %v3667_v2 }
 0x12c   : > { %1154 = vmatpush.msrb.mxu0 %v3647_v0  ;;  %1176 = vmatpush.msrb.mxu1 %v3653_v51  ;;  %4629 = vst [vmem:[#allocation75_spill] sm:$0xff] %v3661_v63 }
 0x12d   : > { %1218 = vmatpush.msrb.mxu2 %v3339_v7  ;;  %1239 = vmatpush.msrb.mxu3 %v3345_v34  ;;  %v1814_v7 = vld [vmem:[%s2653_s9 + $0x88] sm:$0x1]  ;;  %v3676_v34 = vld [vmem:[%s4151_s3 + $0xa0] sm:$0xff]  ;;  %4632 = vst [vmem:[#allocation78_spill] sm:$0xff] %v3682_v44 }
 0x12e   : > { %1155 = vmatpush.msrb.mxu0 %v3661_v63  ;;  %1177 = vmatpush.msrb.mxu1 %v3667_v2  ;;  %4631 = vst [vmem:[#allocation77_spill] sm:$0xff] %v3676_v34 }
 0x12f   : > { %1219 = vmatpush.msrb.mxu2 %v3363_v14  ;;  %1240 = vmatpush.msrb.mxu3 %v3369_v47  ;;  %v1816_v47 = vld [vmem:[%s2653_s9 + $0x98] sm:$0x1]  ;;  %4633 = vst [vmem:[#allocation79_spill] sm:$0xff] %v3697_v33 }
 0x130   : > { %1156 = vmatpush.msrb.mxu0 %v3676_v34  ;;  %1178 = vmatpush.msrb.mxu1 %v3682_v44 }
 0x131   : > { %1220 = vmatpush.msrb.mxu2 %v3387_v4  ;;  %1241 = vmatpush.msrb.mxu3 %v3393_v39  ;;  %v661_v14 = vpop.f32.mrf.mxu0  ;;  %v3712_v39 = vld [vmem:[%s4151_s3 + $0x118] sm:$0xff] }
 0x132   : > { %1075 = vmatmul.f32.gmra.mxu0 %v1814_v7  ;;  %1179 = vmatpush.msrb.mxu1 %v3691_v37  ;;  %v3706_v14 = vld [vmem:[%s4151_s3 + $0x90] sm:$0xff]  ;;  %4634 = vst [vmem:[#allocation80_spill] sm:$0xff] %v3712_v39 }
 0x133   : > { %1157 = vmatpush.msrb.mxu0 %v3697_v33  ;;  %1221 = vmatpush.msrb.mxu2 %v3411_v8  ;;  %v3729_v8 = vld [vmem:[%s4151_s3 + $0x110] sm:$0xff] }
 0x134   : > { %1242 = vmatpush.msrb.mxu3 %v3417_v12  ;;  %1097 = vmatmul.f32.gmra.mxu1 %v1816_v47  ;;  %v3717_v12 = vld [vmem:[%s2653_s9 + $0xa0] sm:$0xff] }
 0x135   : > { %1138 = vmatmul.f32.vlgmr.msra.gmra.mxu3 %v3116_v15  ;;  %1158 = vmatpush.msrb.mxu0 %v3706_v14  ;;  %v3723_v15 = vld [vmem:[%s4151_s3 + $0x88] sm:$0xff] }
 0x136   : > { %1180 = vmatpush.msrb.mxu1 %v3712_v39  ;;  %1222 = vmatpush.msrb.mxu2 %v3435_v28  ;;  %v3744_v28 = vld [vmem:[%s4151_s3 + $0x108] sm:$0xff] }
 0x137   : > { %1243 = vmatpush.msrb.mxu3 %v3441_v30  ;;  %1159 = vmatpush.msrb.mxu0 %v3723_v15  ;;  %v3738_v30 = vld [vmem:[%s4151_s3 + $0x80] sm:$0xff] }
 0x138   : > { %1181 = vmatpush.msrb.mxu1 %v3729_v8  ;;  %1223 = vmatpush.msrb.mxu2 %v3459_v61  ;;  %v3758_v61 = vld [vmem:[%s4151_s3 + $0x100] sm:$0xff] }
 0x139   : > { %1244 = vmatpush.msrb.mxu3 %v3465_v16  ;;  %1116 = vmatmul.f32.vlgmr.msra.gmra.mxu2 %v3717_v12 }
 0x13a   : > { %1160 = vmatpush.msrb.mxu0 %v3738_v30  ;;  %1182 = vmatpush.msrb.mxu1 %v3744_v28  ;;  %v3747_v4 = vpop.f32.mrf.mxu0 }
 0x13b   : > { %1224 = vmatpush.msrb.mxu2 %v3483_v49  ;;  %1245 = vmatpush.msrb.mxu3 %v3489_v35 }
 0x13c   : > { %1161 = vmatmul.f32.vlgmr.msrb.gmra.mxu0 %v1815_v62  ;;  %v3752_v16 = vpop.f32.mrf.mxu1  ;;  %1183 = vmatpush.msrb.mxu1 %v3758_v61  ;;  %v1818_v62 = vld [vmem:[%s2653_s9 + $0xa8] sm:$0x1] }
 0x13d   : > { %1298 = vmatpush.msra.mxu2 %v3507_v53  ;;  %1253 = vmatpush.msra.mxu0 %v3122_v26 }
 0x13e   : > { %1246 = vmatpush.msrb.mxu3 %v3516_v60  ;;  %1184 = vmatmul.f32.vlgmr.msrb.gmra.mxu1 %v3717_v12 }
 0x13f   : > { %1141 = vmatmul.f32.gmra.mxu3 %v1814_v7  ;;  %1254 = vmatpush.msra.mxu0 %v3147_v17 }
 0x140   : > { %1275 = vmatpush.msra.mxu1 %v3153_v21  ;;  %1299 = vmatpush.msra.mxu2 %v3528_v23 }
 0x141   : > { %1321 = vmatpush.msra.mxu3 %v3534_v32  ;;  %1255 = vmatpush.msra.mxu0 %v3173_v40 }
 0x142   : > { %1276 = vmatpush.msra.mxu1 %v3179_v29  ;;  %1300 = vmatpush.msra.mxu2 %v3542_v38 }
 0x143   : > { %1322 = vmatpush.msra.mxu3 %v3548_v5  ;;  %1256 = vmatpush.msra.mxu0 %v3198_v46  ;;  %v770_v7 = vpop.f32.mrf.mxu0 }
 0x144   : > { %1277 = vmatpush.msra.mxu1 %v3206_v31  ;;  %1301 = vmatpush.msra.mxu2 %v3556_v18 }
 0x145   : > { %1323 = vmatpush.msra.mxu3 %v3563_v20  ;;  %1119 = vmatmul.f32.gmra.mxu2 %v1818_v62  ;;  %v792_v32 = vpop.f32.mrf.mxu1 }
 0x146   : > { %1164 = vmatmul.f32.gmra.mxu0 %v1816_v47  ;;  %1278 = vmatpush.msra.mxu1 %v3235_v50 }
 0x147   : > { %1257 = vmatpush.msra.mxu0 %v3229_v48  ;;  %1302 = vmatpush.msra.mxu2 %v3572_v27  ;;  %v4642_v27 = vld [vmem:[#allocation72_spill] sm:$0xff] }
 0x148   : > { %1324 = vmatpush.msra.mxu3 %v3578_v43  ;;  %1187 = vmatmul.f32.gmra.mxu1 %v1818_v62  ;;  %v1822_v62 = vld [vmem:[%s2653_s9 + $0xb0] sm:$0xff]  ;;  %v4640_v43 = vld [vmem:[#allocation68_spill] sm:$0xff] }
 0x149   : > { %1258 = vmatpush.msra.mxu0 %v3254_v56  ;;  %1279 = vmatpush.msra.mxu1 %v3260_v58 }
 0x14a   : > { %1303 = vmatpush.msra.mxu2 %v3587_v41  ;;  %1325 = vmatpush.msra.mxu3 %v3593_v45  ;;  %v4638_v45 = vld [vmem:[#allocation64_spill] sm:$0xff] }
 0x14b   : > { %1259 = vmatpush.msra.mxu0 %v3278_v59  ;;  %1280 = vmatpush.msra.mxu1 %v3284_v9 }
 0x14c   : > { %1304 = vmatpush.msra.mxu2 %v3603_v24  ;;  %1326 = vmatpush.msra.mxu3 %v3609_v1  ;;  %v833_v32 = vpop.f32.mrf.mxu3  ;;  %v4635_v1 = vld [vmem:[#allocation59_spill] sm:$0xff]  ;;  %v4636_v24 = vld [vmem:[#allocation60_spill] sm:$0xff] }
 0x14d   : > { %1260 = vmatpush.msra.mxu0 %v3303_v55  ;;  %1281 = vmatpush.msra.mxu1 %v3309_v3  ;;  %v856_v47 = vpop.f32.mrf.mxu0 }
 0x14e   : > { %1305 = vmatpush.msra.mxu2 %v3617_v22  ;;  %1327 = vmatpush.msra.mxu3 %v3623_v54  ;;  %v857_v22 = vadd.f32 %v856_v47, %v833_v32 }
 0x14f   : > { %1225 = vmatmul.f32.vlgmr.msrb.gmra.mxu2 %v3717_v12  ;;  %1261 = vmatpush.msra.mxu0 %v3327_v36  ;;  %v879_v7 = vpop.f32.mrf.mxu1 }
 0x150   : > { %1282 = vmatpush.msra.mxu1 %v3333_v6  ;;  %1306 = vmatpush.msra.mxu2 %v3639_v52  ;;  %v811_v54 = vpop.f32.mrf.mxu2  ;;  %v3807_v52 = vld [vmem:[%s2653_s9 + $0xa8] sm:$0x1]  ;;  %v880_v32 = vadd.f32 %v879_v7, %v857_v22  ;;  %v4641_v7 = vld [vmem:[#allocation71_spill] sm:$0xff] }
 0x151   : > { %1328 = vmatpush.msra.mxu3 %v3633_v57  ;;  %1262 = vmatpush.msra.mxu0 %v3351_v10  ;;  %v4637_v57 = vld [vmem:[#allocation63_spill] sm:$0xff] }
 0x152   : > { %1247 = vmatmul.f32.vlgmr.msrb.gmra.mxu3 %v1822_v62  ;;  %1283 = vmatpush.msra.mxu1 %v3357_v11 }
 0x153   : > { %1307 = vmatpush.msra.mxu2 %v3647_v0  ;;  %1329 = vmatpush.msra.mxu3 %v3653_v51  ;;  %v4639_v0 = vld [vmem:[#allocation67_spill] sm:$0xff] }
 0x154   : > { %1263 = vmatpush.msra.mxu0 %v4635_v1  ;;  %1284 = vmatpush.msra.mxu1 %v4636_v24 }
 0x155   : > { %1308 = vmatpush.msra.mxu2 %v3661_v63  ;;  %1330 = vmatpush.msra.mxu3 %v3667_v2  ;;  %v1823_v63 = vld [vmem:[%s2653_s9 + $0xb8] sm:$0x1]  ;;  %v790_v2 = vadd.f32 %v3752_v16, %v3747_v4  ;;  %v4643_v16 = vld [vmem:[#allocation9_spill] sm:$0xff] }
 0x156   : > { %1264 = vmatpush.msra.mxu0 %v4637_v57  ;;  %1285 = vmatpush.msra.mxu1 %v4638_v45  ;;  %v836_v47 = vpop.f32.mrf.mxu3 }
 0x157   : > { %1309 = vmatpush.msra.mxu2 %v3676_v34  ;;  %1331 = vmatpush.msra.mxu3 %v3682_v44  ;;  %v859_v51 = vpop.f32.mrf.mxu0  ;;  %v887_v44 = vrot.slane %v880_v32, 1  ;;  %v4645_v32 = vld [vmem:[#allocation13_spill] sm:$0xff] }
 0x158   : > { %1228 = vmatmul.f32.gmra.mxu2 %v3807_v52  ;;  %1265 = vmatpush.msra.mxu0 %v4639_v0  ;;  %v860_v41 = vadd.f32 %v859_v51, %v836_v47  ;;  %v4644_v47 = vld [vmem:[#allocation10_spill] sm:$0xff] }
 0x159   : > { %1286 = vmatpush.msra.mxu1 %v4640_v43  ;;  %1310 = vmatpush.msra.mxu2 %v3697_v33  ;;  %v882_v22 = vpop.f32.mrf.mxu1  ;;  %v812_v33 = vadd.f32 %v811_v54, %v790_v2  ;;  %v3836_v54 = vld [vmem:[%s2653_s9 + $0xc0] sm:$0xff] }
 0x15a   : > { %1332 = vmatpush.msra.mxu3 %v3691_v37  ;;  %1266 = vmatpush.msra.mxu0 %v4641_v7  ;;  %v883_v34 = vadd.f32 %v882_v22, %v860_v41  ;;  %v4646_v22 = vld [vmem:[#allocation16_spill] sm:$0xff] }
 0x15b   : > { %1250 = vmatmul.f32.gmra.mxu3 %v1823_v63  ;;  %1287 = vmatpush.msra.mxu1 %v4642_v27 }
 0x15c   : > { %1311 = vmatpush.msra.mxu2 %v3706_v14  ;;  %1333 = vmatpush.msra.mxu3 %v3712_v39  ;;  %v888_v51 = vrot.slane %v883_v34, 1  ;;  %v814_v4 = vpop.f32.mrf.mxu2  ;;  %v4647_v34 = vld [vmem:[#allocation49_spill] sm:$0xff] }
 0x15d   : > { %1267 = vmatpush.msra.mxu0 %v4643_v16  ;;  %1288 = vmatpush.msra.mxu1 %v4644_v47  ;;  %v4648_v4 = vld [vmem:[#allocation17_spill] sm:$0xff] }
 0x15e   : > { %1312 = vmatpush.msra.mxu2 %v3723_v15  ;;  %1334 = vmatpush.msra.mxu3 %v3729_v8  ;;  %v889_v41 = vsel %vm577_vm0, %v887_v44, %v888_v51  ;;  %v4649_v44 = vld [vmem:[#allocation47_spill] sm:$0xff] }
 0x15f   : > { %1268 = vmatpush.msra.mxu0 %v4645_v32  ;;  %1289 = vmatpush.msra.mxu1 %v4646_v22  ;;  %v891_v39 = vadd.f32 %v889_v41, %v812_v33  ;;  %v4650_v33 = vld [vmem:[#allocation52_spill] sm:$0xff]  ;;  %v4652_v41 = vld [vmem:[#allocation7_spill] sm:$0xff] }
 0x160   : > { %1313 = vmatpush.msra.mxu2 %v3738_v30  ;;  %1335 = vmatpush.msra.mxu3 %v3744_v28 }
 0x161   : > { %1314 = vmatmul.f32.vlgmr.msra.gmra.mxu2 %v1822_v62  ;;  %1362 = vmatpush.msrb.mxu0 %v4647_v34  ;;  %v892_v2 = vadd.f32 %v3100_v13, %v891_v39  ;;  %v4651_v62 = vld [vmem:[#allocation55_spill] sm:$0xff] }
 0x162   : > { %1406 = vmatpush.msrb.mxu2 %v3122_v26  ;;  %1290 = vmatpush.msra.mxu1 %v4648_v4 }
 0x163   : > { %1336 = vmatpush.msra.mxu3 %v3758_v61  ;;  %1363 = vmatpush.msrb.mxu0 %v4649_v44  ;;  %1805 = vst.msk [vmem:[%s3133_s10 + $0x10] sm:$0xff] %vm587_vm1, %v892_v2  ;;  %v3865_v2 = vld [vmem:[%s2653_s9 + $0xc8] sm:$0x1] }
 0x164   : > { %1337 = vmatmul.f32.vlgmr.msra.gmra.mxu3 %v3836_v54  ;;  %1384 = vmatpush.msrb.mxu1 %v4650_v33 }
 0x165   : > { %1407 = vmatpush.msrb.mxu2 %v3147_v17  ;;  %1428 = vmatpush.msrb.mxu3 %v3153_v21  ;;  %v4657_v21 = vld [vmem:[#allocation22_spill] sm:$0xff] }
 0x166   : > { %1364 = vmatpush.msrb.mxu0 %v3159_v19  ;;  %1385 = vmatpush.msrb.mxu1 %v3165_v25  ;;  %v3851_v39 = vpop.f32.mrf.mxu2  ;;  %v4671_v17 = vld [vmem:[#allocation70_spill] sm:$0xff] }
 0x167   : > { %1408 = vmatpush.msrb.mxu2 %v3173_v40  ;;  %1429 = vmatpush.msrb.mxu3 %v3179_v29  ;;  %v4653_v29 = vld [vmem:[#allocation8_spill] sm:$0xff]  ;;  %v4659_v40 = vld [vmem:[#allocation30_spill] sm:$0xff] }
 0x168   : > { %1291 = vmatmul.f32.vlgmr.msra.gmra.mxu1 %v3717_v12  ;;  %1365 = vmatpush.msrb.mxu0 %v3186_v42  ;;  %v4654_v12 = vld [vmem:[#allocation15_spill] sm:$0xff] }
 0x169   : > { %1386 = vmatpush.msrb.mxu1 %v4651_v62  ;;  %1409 = vmatpush.msrb.mxu2 %v3198_v46  ;;  %v3859_v51 = vpop.f32.mrf.mxu3  ;;  %v4655_v46 = vld [vmem:[#allocation14_spill] sm:$0xff] }
 0x16a   : > { %1430 = vmatpush.msrb.mxu3 %v3206_v31  ;;  %1269 = vmatmul.f32.vlgmr.msra.gmra.mxu0 %v3836_v54  ;;  %v4656_v31 = vld [vmem:[#allocation24_spill] sm:$0xff] }
 0x16b   : > { %1317 = vmatmul.f32.gmra.mxu2 %v1823_v63  ;;  %1366 = vmatpush.msrb.mxu0 %v4652_v41 }
 0x16c   : > { %1387 = vmatpush.msrb.mxu1 %v4653_v29  ;;  %1410 = vmatpush.msrb.mxu2 %v3229_v48 }
 0x16d   : > { %1431 = vmatpush.msrb.mxu3 %v3235_v50  ;;  %1367 = vmatpush.msrb.mxu0 %v4654_v12  ;;  %v4658_v50 = vld [vmem:[#allocation32_spill] sm:$0xff] }
 0x16e   : > { %1340 = vmatmul.f32.gmra.mxu3 %v3865_v2  ;;  %1388 = vmatpush.msrb.mxu1 %v4655_v46 }
 0x16f   : > { %1411 = vmatpush.msrb.mxu2 %v3254_v56  ;;  %1432 = vmatpush.msrb.mxu3 %v3260_v58  ;;  %v923_v63 = vpop.f32.mrf.mxu2  ;;  %v4661_v58 = vld [vmem:[#allocation38_spill] sm:$0xff] }
 0x170   : > { %1368 = vmatpush.msrb.mxu0 %v4656_v31  ;;  %1389 = vmatpush.msrb.mxu1 %v4657_v21  ;;  %v4660_v63 = vld [vmem:[#allocation39_spill] sm:$0xff] }
 0x171   : > { %1412 = vmatpush.msrb.mxu2 %v3278_v59  ;;  %1433 = vmatpush.msrb.mxu3 %v3284_v9  ;;  %v4662_v9 = vld [vmem:[#allocation45_spill] sm:$0xff] }
 0x172   : > { %1294 = vmatmul.f32.gmra.mxu1 %v3807_v52  ;;  %1369 = vmatpush.msrb.mxu0 %v4658_v50  ;;  %v945_v48 = vpop.f32.mrf.mxu3  ;;  %v4663_v52 = vld [vmem:[#allocation44_spill] sm:$0xff] }
 0x173   : > { %1390 = vmatpush.msrb.mxu1 %v4659_v40  ;;  %1413 = vmatpush.msrb.mxu2 %v3303_v55  ;;  %v4664_v48 = vld [vmem:[#allocation50_spill] sm:$0xff] }
 0x174   : > { %1434 = vmatpush.msrb.mxu3 %v3309_v3  ;;  %1370 = vmatpush.msrb.mxu0 %v4660_v63  ;;  %v4665_v3 = vld [vmem:[#allocation58_spill] sm:$0xff] }
 0x175   : > { %1391 = vmatpush.msrb.mxu1 %v4661_v58  ;;  %1414 = vmatpush.msrb.mxu2 %v3327_v36  ;;  %v4666_v36 = vld [vmem:[#allocation61_spill] sm:$0xff] }
 0x176   : > { %1435 = vmatpush.msrb.mxu3 %v3333_v6  ;;  %1371 = vmatpush.msrb.mxu0 %v4662_v9  ;;  %v4667_v6 = vld [vmem:[#allocation62_spill] sm:$0xff] }
 0x177   : > { %1392 = vmatpush.msrb.mxu1 %v4663_v52  ;;  %1415 = vmatpush.msrb.mxu2 %v3351_v10  ;;  %v4669_v10 = vld [vmem:[#allocation66_spill] sm:$0xff] }
 0x178   : > { %1436 = vmatpush.msrb.mxu3 %v3357_v11  ;;  %1372 = vmatpush.msrb.mxu0 %v4664_v48  ;;  %v1009_v55 = vpop.f32.mrf.mxu2  ;;  %v4668_v11 = vld [vmem:[#allocation65_spill] sm:$0xff] }
 0x179   : > { %1393 = vmatpush.msrb.mxu1 %v4665_v3  ;;  %1416 = vmatpush.msrb.mxu2 %v4635_v1  ;;  %v986_v59 = vpop.f32.mrf.mxu1  ;;  %v4670_v1 = vld [vmem:[#allocation69_spill] sm:$0xff] }
 0x17a   : > { %1437 = vmatpush.msrb.mxu3 %v4636_v24  ;;  %1373 = vmatpush.msrb.mxu0 %v4666_v36  ;;  %v1010_v24 = vadd.f32 %v1009_v55, %v986_v59 }
 0x17b   : > { %1394 = vmatpush.msrb.mxu1 %v4667_v6  ;;  %1417 = vmatpush.msrb.mxu2 %v4637_v57  ;;  %v1032_v56 = vpop.f32.mrf.mxu3  ;;  %v4672_v57 = vld [vmem:[#allocation6_spill] sm:$0xff] }
 0x17c   : > { %1438 = vmatpush.msrb.mxu3 %v4638_v45  ;;  %1374 = vmatpush.msrb.mxu0 %v4668_v11  ;;  %v4673_v45 = vld [vmem:[#allocation73_spill] sm:$0xff] }
 0x17d   : > { %1395 = vmatpush.msrb.mxu1 %v4669_v10  ;;  %1418 = vmatpush.msrb.mxu2 %v4639_v0 }
 0x17e   : > { %1439 = vmatpush.msrb.mxu3 %v4640_v43  ;;  %1375 = vmatpush.msrb.mxu0 %v4670_v1  ;;  %v1033_v43 = vadd.f32 %v1032_v56, %v1010_v24  ;;  %v964_v56 = vpop.f32.mrf.mxu0 }
 0x17f   : > { %1396 = vmatpush.msrb.mxu1 %v4671_v17  ;;  %1419 = vmatpush.msrb.mxu2 %v4641_v7 }
 0x180   : > { %1440 = vmatpush.msrb.mxu3 %v4642_v27  ;;  %1376 = vmatpush.msrb.mxu0 %v4672_v57  ;;  %v943_v27 = vadd.f32 %v3859_v51, %v3851_v39  ;;  %v1040_v24 = vrot.slane %v1033_v43, 1  ;;  %v1829_v39 = vld [vmem:[%s2653_s9 + $0xd0] sm:$0xff]  ;;  %v1828_v51 = vld [vmem:[%s2653_s9 + $0xc8] sm:$0x1] }
 0x181   : > { %1397 = vmatpush.msrb.mxu1 %v4673_v45  ;;  %1420 = vmatpush.msrb.mxu2 %v4643_v16  ;;  %v4674_v16 = vld [vmem:[#allocation19_spill] sm:$0xff] }
 0x182   : > { %1441 = vmatpush.msrb.mxu3 %v4644_v47  ;;  %1377 = vmatpush.msrb.mxu0 %v3483_v49  ;;  %v1012_v0 = vpop.f32.mrf.mxu2 }
 0x183   : > { %1398 = vmatpush.msrb.mxu1 %v3489_v35  ;;  %1421 = vmatpush.msrb.mxu2 %v4645_v32  ;;  %v989_v59 = vpop.f32.mrf.mxu1 }
 0x184   : > { %1442 = vmatpush.msrb.mxu3 %v4646_v22  ;;  %1451 = vmatpush.msra.mxu0 %v3507_v53  ;;  %v1013_v55 = vadd.f32 %v1012_v0, %v989_v59 }
 0x185   : > { %1514 = vmatpush.msra.mxu2 %v4647_v34  ;;  %1399 = vmatpush.msrb.mxu1 %v3516_v60  ;;  %v1035_v47 = vpop.f32.mrf.mxu3  ;;  %v965_v34 = vadd.f32 %v964_v56, %v943_v27  ;;  %v4708_v56 = vld [vmem:[#allocation34_spill] sm:$0xff] }
 0x186   : > { %1443 = vmatpush.msrb.mxu3 %v4648_v4  ;;  %1452 = vmatpush.msra.mxu0 %v3528_v23  ;;  %v1036_v32 = vadd.f32 %v1035_v47, %v1013_v55  ;;  %v4707_v55 = vld [vmem:[#allocation48_spill] sm:$0xff] }
 0x187   : > { %1474 = vmatpush.msra.mxu1 %v4674_v16  ;;  %1515 = vmatpush.msra.mxu2 %v4649_v44  ;;  %v4678_v44 = vld [vmem:[#allocation29_spill] sm:$0xff] }
 0x188   : > { %1536 = vmatpush.msra.mxu3 %v4650_v33  ;;  %1453 = vmatpush.msra.mxu0 %v3542_v38  ;;  %v1041_v0 = vrot.slane %v1036_v32, 1  ;;  %v4675_v32 = vld [vmem:[#allocation21_spill] sm:$0xff] }
 0x189   : > { %1475 = vmatpush.msra.mxu1 %v3548_v5  ;;  %1516 = vmatpush.msra.mxu2 %v3159_v19  ;;  %v4676_v19 = vld [vmem:[#allocation25_spill] sm:$0xff] }
 0x18a   : > { %1537 = vmatpush.msra.mxu3 %v3165_v25  ;;  %1454 = vmatpush.msra.mxu0 %v3556_v18  ;;  %v1042_v43 = vsel %vm577_vm0, %v1040_v24, %v1041_v0  ;;  %v4677_v25 = vld [vmem:[#allocation23_spill] sm:$0xff]  ;;  %v4680_v33 = vld [vmem:[#allocation33_spill] sm:$0xff] }
 0x18b   : > { %1476 = vmatpush.msra.mxu1 %v3563_v20  ;;  %1517 = vmatpush.msra.mxu2 %v3186_v42  ;;  %v1044_v47 = vadd.f32 %v1042_v43, %v965_v34  ;;  %v4679_v42 = vld [vmem:[#allocation27_spill] sm:$0xff]  ;;  %v4710_v43 = vld [vmem:[#allocation41_spill] sm:$0xff] }
 0x18c   : > { %1538 = vmatpush.msra.mxu3 %v4651_v62  ;;  %1272 = vmatmul.f32.gmra.mxu0 %v3865_v2  ;;  %v4684_v62 = vld [vmem:[#allocation40_spill] sm:$0xff]  ;;  %v4709_v34 = vld [vmem:[#allocation59_spill] sm:$0xff] }
 0x18d   : > { %1455 = vmatpush.msra.mxu0 %v4675_v32  ;;  %1477 = vmatpush.msra.mxu1 %v4676_v19  ;;  %v1045_v27 = vadd.f32 %v3100_v13, %v1044_v47  ;;  %v4681_v13 = vld [vmem:[#allocation31_spill] sm:$0xff]  ;;  %v1835_v47 = vld [vmem:[%s2653_s9 + $0xe8] sm:$0x1] }
 0x18e   : > { %1518 = vmatpush.msra.mxu2 %v4652_v41  ;;  %1539 = vmatpush.msra.mxu3 %v4653_v29  ;;  %v4682_v29 = vld [vmem:[#allocation37_spill] sm:$0xff] }
 0x18f   : > { %1456 = vmatpush.msra.mxu0 %v4677_v25  ;;  %1478 = vmatpush.msra.mxu1 %v4678_v44  ;;  %1812 = vst.msk [vmem:[%s3133_s10 + $0x18] sm:$0xff] %vm587_vm1, %v1045_v27  ;;  %v4689_v41 = vld [vmem:[#allocation77_spill] sm:$0xff] }
 0x190   : > { %1519 = vmatpush.msra.mxu2 %v4654_v12  ;;  %1540 = vmatpush.msra.mxu3 %v4655_v46  ;;  %v4683_v46 = vld [vmem:[#allocation35_spill] sm:$0xff] }
 0x191   : > { %1457 = vmatpush.msra.mxu0 %v4679_v42  ;;  %1479 = vmatpush.msra.mxu1 %v4680_v33  ;;  %v4691_v12 = vld [vmem:[#allocation79_spill] sm:$0xff] }
 0x192   : > { %1520 = vmatpush.msra.mxu2 %v4656_v31  ;;  %1541 = vmatpush.msra.mxu3 %v4657_v21  ;;  %v4685_v21 = vld [vmem:[#allocation43_spill] sm:$0xff]  ;;  %v4686_v31 = vld [vmem:[#allocation74_spill] sm:$0xff] }
 0x193   : > { %1458 = vmatpush.msra.mxu0 %v4681_v13  ;;  %1480 = vmatpush.msra.mxu1 %v4682_v29 }
 0x194   : > { %1521 = vmatpush.msra.mxu2 %v4658_v50  ;;  %1542 = vmatpush.msra.mxu3 %v4659_v40  ;;  %v4687_v40 = vld [vmem:[#allocation75_spill] sm:$0xff]  ;;  %v4688_v50 = vld [vmem:[#allocation76_spill] sm:$0xff] }
 0x195   : > { %1378 = vmatmul.f32.vlgmr.msrb.gmra.mxu0 %v3836_v54  ;;  %1481 = vmatpush.msra.mxu1 %v4683_v46 }
 0x196   : > { %1459 = vmatpush.msra.mxu0 %v4684_v62  ;;  %1522 = vmatpush.msra.mxu2 %v4660_v63 }
 0x197   : > { %1543 = vmatpush.msra.mxu3 %v4661_v58  ;;  %1400 = vmatmul.f32.vlgmr.msrb.gmra.mxu1 %v1829_v39  ;;  %v4690_v58 = vld [vmem:[#allocation78_spill] sm:$0xff] }
 0x198   : > { %1460 = vmatpush.msra.mxu0 %v4685_v21  ;;  %1482 = vmatpush.msra.mxu1 %v4686_v31 }
 0x199   : > { %1523 = vmatpush.msra.mxu2 %v4662_v9  ;;  %1544 = vmatpush.msra.mxu3 %v4663_v52  ;;  %v1830_v9 = vld [vmem:[%s2653_s9 + $0xd8] sm:$0x1]  ;;  %v4705_v52 = vld [vmem:[#allocation42_spill] sm:$0xff] }
 0x19a   : > { %1461 = vmatpush.msra.mxu0 %v4687_v40  ;;  %1483 = vmatpush.msra.mxu1 %v4688_v50 }
 0x19b   : > { %1524 = vmatpush.msra.mxu2 %v4664_v48  ;;  %1545 = vmatpush.msra.mxu3 %v4665_v3  ;;  %v4692_v3 = vld [vmem:[#allocation80_spill] sm:$0xff]  ;;  %v4706_v48 = vld [vmem:[#allocation26_spill] sm:$0xff] }
 0x19c   : > { %1462 = vmatpush.msra.mxu0 %v4689_v41  ;;  %1484 = vmatpush.msra.mxu1 %v4690_v58 }
 0x19d   : > { %1525 = vmatpush.msra.mxu2 %v4666_v36  ;;  %1546 = vmatpush.msra.mxu3 %v4667_v6  ;;  %v967_v2 = vpop.f32.mrf.mxu0  ;;  %v3984_v36 = vld [vmem:[%s2653_s9 + $0xe0] sm:$0xff] }
 0x19e   : > { %1381 = vmatmul.f32.gmra.mxu0 %v1828_v51  ;;  %1485 = vmatpush.msra.mxu1 %v3691_v37 }
 0x19f   : > { %1463 = vmatpush.msra.mxu0 %v4691_v12  ;;  %1526 = vmatpush.msra.mxu2 %v4668_v11  ;;  %v4694_v11 = vld [vmem:[#allocation53_spill] sm:$0xff] }
 0x1a0   : > { %1547 = vmatpush.msra.mxu3 %v4669_v10  ;;  %1403 = vmatmul.f32.gmra.mxu1 %v1830_v9  ;;  %v1832_v10 = vld [vmem:[%s2653_s9 + $0xe8] sm:$0x1] }
 0x1a1   : > { %1444 = vmatmul.f32.vlgmr.msrb.gmra.mxu3 %v3836_v54  ;;  %1464 = vmatpush.msra.mxu0 %v3706_v14 }
 0x1a2   : > { %1486 = vmatpush.msra.mxu1 %v4692_v3  ;;  %1527 = vmatpush.msra.mxu2 %v4670_v1  ;;  %v4703_v1 = vld [vmem:[#allocation36_spill] sm:$0xff] }
 0x1a3   : > { %1548 = vmatpush.msra.mxu3 %v4671_v17  ;;  %1465 = vmatpush.msra.mxu0 %v3723_v15 }
 0x1a4   : > { %1487 = vmatpush.msra.mxu1 %v3729_v8  ;;  %1528 = vmatpush.msra.mxu2 %v4672_v57  ;;  %v4693_v57 = vld [vmem:[#allocation51_spill] sm:$0xff] }
 0x1a5   : > { %1549 = vmatpush.msra.mxu3 %v4673_v45  ;;  %1422 = vmatmul.f32.vlgmr.msrb.gmra.mxu2 %v3984_v36  ;;  %v4029_v45 = vld [vmem:[%s2653_s9 + $0xf0] sm:$0xff] }
 0x1a6   : > { %1466 = vmatpush.msra.mxu0 %v3738_v30  ;;  %1488 = vmatpush.msra.mxu1 %v3744_v28  ;;  %v3994_v6 = vpop.f32.mrf.mxu0 }
 0x1a7   : > { %1529 = vmatpush.msra.mxu2 %v3483_v49  ;;  %1550 = vmatpush.msra.mxu3 %v3489_v35  ;;  %v4695_v49 = vld [vmem:[#allocation54_spill] sm:$0xff]  ;;  %v4697_v35 = vld [vmem:[#allocation56_spill] sm:$0xff] }
 0x1a8   : > { %1467 = vmatmul.f32.vlgmr.msra.gmra.mxu0 %v1829_v39  ;;  %v3999_v17 = vpop.f32.mrf.mxu1  ;;  %1489 = vmatpush.msra.mxu1 %v3758_v61 }
 0x1a9   : > { %1603 = vmatpush.msrb.mxu2 %v3507_v53  ;;  %1558 = vmatpush.msrb.mxu0 %v3122_v26  ;;  %v4696_v26 = vld [vmem:[#allocation5_spill] sm:$0xff]  ;;  %v1096_v39 = vadd.f32 %v3999_v17, %v3994_v6 }
 0x1aa   : > { %1551 = vmatpush.msra.mxu3 %v3516_v60  ;;  %1490 = vmatmul.f32.vlgmr.msra.gmra.mxu1 %v3984_v36 }
 0x1ab   : > { %1447 = vmatmul.f32.gmra.mxu3 %v1828_v51  ;;  %1559 = vmatpush.msrb.mxu0 %v4693_v57  ;;  %v1512_v51 = vld [vmem:[%s4068_s12] sm:$0xff] }
 0x1ac   : > { %1604 = vmatpush.msrb.mxu2 %v3528_v23  ;;  %1626 = vmatpush.msrb.mxu3 %v4674_v16  ;;  %v4698_v23 = vld [vmem:[#allocation11_spill] sm:$0xff]  ;;  %v4704_v16 = vld [vmem:[#allocation18_spill] sm:$0xff] }
 0x1ad   : > { %1560 = vmatpush.msrb.mxu0 %v4694_v11  ;;  %1580 = vmatpush.msrb.mxu1 %v4695_v49 }
 0x1ae   : > { %1605 = vmatpush.msrb.mxu2 %v3542_v38  ;;  %1627 = vmatpush.msrb.mxu3 %v3548_v5  ;;  %v4699_v38 = vld [vmem:[#allocation20_spill] sm:$0xff]  ;;  %v4700_v5 = vld [vmem:[#allocation57_spill] sm:$0xff] }
 0x1af   : > { %1561 = vmatpush.msrb.mxu0 %v4696_v26  ;;  %1425 = vmatmul.f32.gmra.mxu2 %v1832_v10  ;;  %v1076_v60 = vpop.f32.mrf.mxu0 }
 0x1b0   : > { %1606 = vmatpush.msrb.mxu2 %v3556_v18  ;;  %1628 = vmatpush.msrb.mxu3 %v3563_v20  ;;  %v4701_v20 = vld [vmem:[#allocation28_spill] sm:$0xff] }
 0x1b1   : > { %1470 = vmatmul.f32.gmra.mxu0 %v1830_v9  ;;  %1581 = vmatpush.msrb.mxu1 %v4697_v35  ;;  %v1098_v53 = vpop.f32.mrf.mxu1  ;;  %v4702_v18 = vld [vmem:[#allocation12_spill] sm:$0xff] }
 0x1b2   : > { %1562 = vmatpush.msrb.mxu0 %v4698_v23  ;;  %1607 = vmatpush.msrb.mxu2 %v4675_v32  ;;  %v4711_v32 = vld [vmem:[#allocation63_spill] sm:$0xff]  ;;  %v4719_v9 = vld [vmem:[#allocation72_spill] sm:$0xff] }
 0x1b3   : > { %1629 = vmatpush.msrb.mxu3 %v4676_v19  ;;  %1493 = vmatmul.f32.gmra.mxu1 %v1832_v10  ;;  %v4712_v19 = vld [vmem:[#allocation46_spill] sm:$0xff] }
 0x1b4   : > { %1563 = vmatpush.msrb.mxu0 %v4699_v38  ;;  %1582 = vmatpush.msrb.mxu1 %v4700_v5 }
 0x1b5   : > { %1608 = vmatpush.msrb.mxu2 %v4677_v25  ;;  %1630 = vmatpush.msrb.mxu3 %v4678_v44  ;;  %v4713_v44 = vld [vmem:[#allocation67_spill] sm:$0xff] }
 0x1b6   : > { %1564 = vmatpush.msrb.mxu0 %v4701_v20  ;;  %1583 = vmatpush.msrb.mxu1 %v4702_v18 }
 0x1b7   : > { %1609 = vmatpush.msrb.mxu2 %v4679_v42  ;;  %1631 = vmatpush.msrb.mxu3 %v4680_v33  ;;  %v1837_v42 = vld [vmem:[%s2653_s9 + $0xf8] sm:$0x1] }
 0x1b8   : > { %1565 = vmatpush.msrb.mxu0 %v4703_v1  ;;  %1584 = vmatpush.msrb.mxu1 %v4704_v16  ;;  %v1139_v54 = vpop.f32.mrf.mxu3 }
 0x1b9   : > { %1610 = vmatpush.msrb.mxu2 %v4681_v13  ;;  %1632 = vmatpush.msrb.mxu3 %v4682_v29  ;;  %v1162_v63 = vpop.f32.mrf.mxu0  ;;  %v4714_v13 = vld [vmem:[#allocation60_spill] sm:$0xff] }
 0x1ba   : > { %1530 = vmatmul.f32.vlgmr.msra.gmra.mxu2 %v3984_v36  ;;  %1552 = vmatmul.f32.vlgmr.msra.gmra.mxu3 %v4029_v45  ;;  %v1163_v24 = vadd.f32 %v1162_v63, %v1139_v54 }
 0x1bb   : > { %1566 = vmatpush.msrb.mxu0 %v4705_v52  ;;  %1585 = vmatpush.msrb.mxu1 %v4706_v48  ;;  %v1185_v59 = vpop.f32.mrf.mxu1 }
 0x1bc   : > { %1611 = vmatpush.msrb.mxu2 %v4684_v62  ;;  %1633 = vmatpush.msrb.mxu3 %v4683_v46  ;;  %v1117_v0 = vpop.f32.mrf.mxu2  ;;  %v1186_v27 = vadd.f32 %v1185_v59, %v1163_v24  ;;  %v4715_v62 = vld [vmem:[#allocation64_spill] sm:$0xff] }
 0x1bd   : > { %1567 = vmatpush.msrb.mxu0 %v4707_v55  ;;  %1586 = vmatpush.msrb.mxu1 %v4708_v56 }
 0x1be   : > { %1612 = vmatpush.msrb.mxu2 %v4685_v21  ;;  %1634 = vmatpush.msrb.mxu3 %v4686_v31  ;;  %v1193_v21 = vrot.slane %v1186_v27, 1 }
 0x1bf   : > { %1568 = vmatpush.msrb.mxu0 %v4709_v34  ;;  %1587 = vmatpush.msrb.mxu1 %v4710_v43 }
 0x1c0   : > { %1613 = vmatpush.msrb.mxu2 %v4687_v40  ;;  %1635 = vmatpush.msrb.mxu3 %v4688_v50  ;;  %v4716_v40 = vld [vmem:[#allocation9_spill] sm:$0xff] }
 0x1c1   : > { %1569 = vmatpush.msrb.mxu0 %v4711_v32  ;;  %1588 = vmatpush.msrb.mxu1 %v4712_v19 }
 0x1c2   : > { %1614 = vmatpush.msrb.mxu2 %v4689_v41  ;;  %1636 = vmatpush.msrb.mxu3 %v4690_v58  ;;  %v1142_v25 = vpop.f32.mrf.mxu3  ;;  %v1118_v41 = vadd.f32 %v1117_v0, %v1096_v39  ;;  %v4718_v58 = vld [vmem:[#allocation13_spill] sm:$0xff] }
 0x1c3   : > { %1533 = vmatmul.f32.gmra.mxu2 %v1835_v47  ;;  %1570 = vmatpush.msrb.mxu0 %v4713_v44  ;;  %v1165_v33 = vpop.f32.mrf.mxu0 }
 0x1c4   : > { %1589 = vmatpush.msrb.mxu1 %v4714_v13  ;;  %1615 = vmatpush.msrb.mxu2 %v4691_v12  ;;  %v1166_v29 = vadd.f32 %v1165_v33, %v1142_v25 }
 0x1c5   : > { %1637 = vmatpush.msrb.mxu3 %v3691_v37  ;;  %1571 = vmatpush.msrb.mxu0 %v4641_v7  ;;  %v1188_v46 = vpop.f32.mrf.mxu1  ;;  %v4717_v37 = vld [vmem:[#allocation68_spill] sm:$0xff] }
 0x1c6   : > { %1555 = vmatmul.f32.gmra.mxu3 %v1837_v42  ;;  %1590 = vmatpush.msrb.mxu1 %v4715_v62  ;;  %v1189_v31 = vadd.f32 %v1188_v46, %v1166_v29 }
 0x1c7   : > { %1616 = vmatpush.msrb.mxu2 %v3706_v14  ;;  %1638 = vmatpush.msrb.mxu3 %v4692_v3 }
 0x1c8   : > { %1572 = vmatpush.msrb.mxu0 %v4716_v40  ;;  %1591 = vmatpush.msrb.mxu1 %v4717_v37  ;;  %v1194_v7 = vrot.slane %v1189_v31, 1  ;;  %v1120_v50 = vpop.f32.mrf.mxu2 }
 0x1c9   : > { %1617 = vmatpush.msrb.mxu2 %v3723_v15  ;;  %1639 = vmatpush.msrb.mxu3 %v3729_v8  ;;  %v4720_v15 = vld [vmem:[#allocation10_spill] sm:$0xff]  ;;  %v4088_v8 = vld [vmem:[%s4152_s4] ss:$0 sm:$0xff] }
 0x1ca   : > { %1573 = vmatpush.msrb.mxu0 %v4718_v58  ;;  %1592 = vmatpush.msrb.mxu1 %v4719_v9  ;;  %v1195_v14 = vsel %vm577_vm0, %v1193_v21, %v1194_v7 }
 0x1cb   : > { %1618 = vmatpush.msrb.mxu2 %v3738_v30  ;;  %1640 = vmatpush.msrb.mxu3 %v3744_v28  ;;  %v1197_v2 = vadd.f32 %v1195_v14, %v1118_v41  ;;  %v1513_v30 = vld [vmem:[%s4068_s12 + $0x8] sm:$0x1]  ;;  %s2025_s12 = scalar_lea.hbm %s4153_s5, 128 }
 0x1cc   : > { %1574 = vmatmul.f32.vlgmr.msrb.gmra.mxu0 %v1512_v51  ;;  %1619 = vmatmul.f32.vlgmr.msrb.gmra.mxu2 %v4029_v45  ;;  %p2027_p2 = scmp.lt.s32.totalorder %s2025_s12, %s2021_s27 }
 0x1cd   : > { %1593 = vmatpush.msrb.mxu1 %v4720_v15  ;;  %1641 = vmatpush.msrb.mxu3 %v3758_v61  ;;  %v1198_v12 = vadd.f32 %v4088_v8, %v1197_v2 }
 0x1ce   : > { %1642 = vmatmul.f32.vlgmr.msrb.gmra.mxu3 %v1512_v51  ;;  %p2028_p3 = por %p2027_p2, %p2026_p1 }
 0x1cf   : > { %1594 = vmatpush.msrb.mxu1 %v4646_v22  ;;  %1819 = vst.msk [vmem:[%s3133_s10 + $0x20] sm:$0xff] %vm587_vm1, %v1198_v12 }
 0x1d0   : > { %p2029_p5 = pnand %p2028_p3, %p2024_p0 }
 0x1d1   : > { %1595 = vmatpush.msrb.mxu1 %v4648_v4 }
 0x1d2   : > { %1596 = vmatmul.f32.vlgmr.msrb.gmra.mxu1 %v3984_v36  ;;  %v1226_v28 = vpop.f32.mrf.mxu2 }
 0x1d4   : > { %1622 = vmatmul.f32.gmra.mxu2 %v1837_v42  ;;  %1577 = vmatmul.f32.gmra.mxu0 %v1513_v30 }
 0x1d5   : > { %v1248_v61 = vpop.f32.mrf.mxu3 }
 0x1d6   : > { %1645 = vmatmul.f32.gmra.mxu3 %v1513_v30  ;;  %v1249_v60 = vadd.f32 %v1248_v61, %v1226_v28 }
 0x1da   : > { %1599 = vmatmul.f32.gmra.mxu1 %v1835_v47 }
 0x1db   : > { %v1229_v3 = vpop.f32.mrf.mxu2 }
 0x1de   : > { %v1251_v6 = vpop.f32.mrf.mxu3 }
 0x1e4   : > { %v1315_v17 = vpop.f32.mrf.mxu2 }
 0x1e5   : > { %v1292_v57 = vpop.f32.mrf.mxu1 }
 0x1e6   : > { %v1316_v22 = vadd.f32 %v1315_v17, %v1292_v57 }
 0x1e7   : > { %v1338_v10 = vpop.f32.mrf.mxu3  ;;  %v1270_v35 = vpop.f32.mrf.mxu0 }
 0x1e8   : > { %v1339_v11 = vadd.f32 %v1338_v10, %v1316_v22  ;;  %v1271_v5 = vadd.f32 %v1270_v35, %v1249_v60 }
 0x1ea   : > { %v1346_v53 = vrot.slane %v1339_v11, 1 }
 0x1ee   : > { %v1318_v49 = vpop.f32.mrf.mxu2 }
 0x1ef   : > { %v1295_v26 = vpop.f32.mrf.mxu1 }
 0x1f0   : > { %v1319_v4 = vadd.f32 %v1318_v49, %v1295_v26 }
 0x1f1   : > { %v1341_v36 = vpop.f32.mrf.mxu3 }
 0x1f2   : > { %v1342_v23 = vadd.f32 %v1341_v36, %v1319_v4 }
 0x1f4   : > { %v1347_v38 = vrot.slane %v1342_v23, 1 }
 0x1f6   : > { %v1348_v20 = vsel %vm577_vm0, %v1346_v53, %v1347_v38 }
 0x1f7   : > { %v1350_v18 = vadd.f32 %v1348_v20, %v1271_v5 }
 0x1f9   : > { %v1351_v45 = vadd.f32 %v4088_v8, %v1350_v18 }
 0x1fb   : > { %1826 = vst.msk [vmem:[%s3133_s10 + $0x28] sm:$0xff] %vm587_vm1, %v1351_v45 }
 0x209   : > { %v1273_v1 = vpop.f32.mrf.mxu0 }
 0x212   : > { %v1379_v16 = vpop.f32.mrf.mxu0 }
 0x214   : > { %v1401_v54 = vpop.f32.mrf.mxu1 }
 0x215   : > { %v1402_v32 = vadd.f32 %v1401_v54, %v1379_v16 }
 0x21b   : > { %v1382_v63 = vpop.f32.mrf.mxu0 }
 0x21d   : > { %v1404_v52 = vpop.f32.mrf.mxu1 }
 0x224   : > { %v1445_v48 = vpop.f32.mrf.mxu3 }
 0x225   : > { %v1468_v59 = vpop.f32.mrf.mxu0 }
 0x226   : > { %v1469_v24 = vadd.f32 %v1468_v59, %v1445_v48 }
 0x227   : > { %v1491_v55 = vpop.f32.mrf.mxu1 }
 0x228   : > { %v1423_v56 = vpop.f32.mrf.mxu2  ;;  %v1492_v0 = vadd.f32 %v1491_v55, %v1469_v24 }
 0x229   : > { %v1424_v33 = vadd.f32 %v1423_v56, %v1402_v32 }
 0x22a   : > { %v1499_v27 = vrot.slane %v1492_v0, 1 }
 0x22e   : > { %v1448_v34 = vpop.f32.mrf.mxu3  ;;  %v1471_v43 = vpop.f32.mrf.mxu0 }
 0x22f   : > { %v1472_v47 = vadd.f32 %v1471_v43, %v1448_v34 }
 0x230   : > { %v1494_v19 = vpop.f32.mrf.mxu1 }
 0x231   : > { %v1495_v25 = vadd.f32 %v1494_v19, %v1472_v47 }
 0x232   : > { %v1426_v44 = vpop.f32.mrf.mxu2 }
 0x233   : > { %v1500_v42 = vrot.slane %v1495_v25, 1 }
 0x235   : > { %v1501_v13 = vsel %vm577_vm0, %v1499_v27, %v1500_v42 }
 0x236   : > { %v1503_v29 = vadd.f32 %v1501_v13, %v1424_v33 }
 0x238   : > { %v1504_v39 = vadd.f32 %v4088_v8, %v1503_v29 }
 0x23a   : > { %1833 = vst.msk [vmem:[%s3133_s10 + $0x30] sm:$0xff] %vm587_vm1, %v1504_v39 }
 0x23d   : > { %v1531_v46 = vpop.f32.mrf.mxu2  ;;  %v1553_v62 = vpop.f32.mrf.mxu3 }
 0x23e   : > { %v1554_v28 = vadd.f32 %v1553_v62, %v1531_v46 }
 0x246   : > { %v1534_v21 = vpop.f32.mrf.mxu2 }
 0x249   : > { %v1556_v31 = vpop.f32.mrf.mxu3  ;;  %v1575_v40 = vpop.f32.mrf.mxu0 }
 0x24a   : > { %v1576_v3 = vadd.f32 %v1575_v40, %v1554_v28 }
 0x24f   : > { %v1597_v37 = vpop.f32.mrf.mxu1  ;;  %v1620_v7 = vpop.f32.mrf.mxu2 }
 0x250   : > { %v1621_v41 = vadd.f32 %v1620_v7, %v1597_v37 }
 0x251   : > { %v1643_v50 = vpop.f32.mrf.mxu3  ;;  %v1578_v51 = vpop.f32.mrf.mxu0 }
 0x252   : > { %v1644_v14 = vadd.f32 %v1643_v50, %v1621_v41 }
 0x254   : > { %v1651_v30 = vrot.slane %v1644_v14, 1 }
 0x257   : > { %v1600_v58 = vpop.f32.mrf.mxu1  ;;  %v1623_v9 = vpop.f32.mrf.mxu2 }
 0x258   : > { %v1624_v2 = vadd.f32 %v1623_v9, %v1600_v58 }
 0x259   : > { %v1646_v15 = vpop.f32.mrf.mxu3 }
 0x25a   : > { %v1647_v12 = vadd.f32 %v1646_v15, %v1624_v2 }
 0x25c   : > { %v1652_v61 = vrot.slane %v1647_v12, 1 }
 0x25e   : > { %v1653_v6 = vsel %vm577_vm0, %v1651_v30, %v1652_v61 }
 0x25f   : > { %v1655_v17 = vadd.f32 %v1653_v6, %v1576_v3 }
 0x261   : > { %v1656_v57 = vadd.f32 %v4088_v8, %v1655_v17 }
 0x263   : > { %1838 = vst.msk [vmem:[%s3133_s10 + $0x38] sm:$0xff] %vm587_vm1, %v1656_v57 }
 0x264   : > { %2032 = shalt.err (!%p2029_p5)
}
 0x265   : > { %s2085_s13 = smov 128   ;;  %s2086_s10 = smov 8  }
 0x266   : > { %1849 = dma.vmem_to_hbm [thread:$0]  (%p2157_p4), %s1675_s24, 1024, %s1677_s15, %s1660_s21, %s2085_s13, %s2085_s13, %s2086_s10  }
 0x267 PF: > { %p1856_p6 = scmp.ge.s32.totalorder %s2083_s23, 2  ;;  %s1691_s8 = sand.u32 1, %s2063_s18  }
 0x268   : > { %s1692_s11 = scalar_lea.sflag [#allocation3], %s1691_s8 }
 0x269   : > { %p1852_p7 = pnand %p1856_p6, %p2164_p8 }
 0x26b   : > { %p1853_p9 = pneg %p1852_p7 }
 0x26d   : > { %2058 = dma.done.wait (%p1853_p9), %s1692_s11, 1024  }
 0x26e   : > { %2060 = vsyncadd (%p1853_p9), %s1692_s11, 4294966272  ;;  %s18_s23 = sadd.s32 1, %s2083_s23   ;;  %s4721_s18 = smov %s2067_s19 }
 0x26f   : > { %p15_p10 = scmp.ge.s32.totalorder %s18_s23, 4   ;;  %s4722_s19 = smov %s2071_s20 }
 0x270   : > { %s4723_s20 = smov %s2170_s6  ;;  %s4724_s21 = smov %s2079_s22 }
 0x271   : > { %s4725_s22 = smov %s4727_s26  ;;  %17 = sbr.rel (!%p15_p10) target bundleno = 4 (0x4), region = 100 }
 0x276   :  { %1698 = vsyncpa [#allocation3], 1 }
 0x277   :  { %1700 = vsyncpa [#allocation3 + $0x1], 1 }

</bundles_post_ra>
